<compile_context>
chip_gen: v7x
topology: tpu7x:2x2x1
jax: 0.10.0
libtpu: 0.0.40
codegen_flags: <defaults>
</compile_context>

<pallas_src>
import jax
import jax.numpy as jnp
from jax import lax
from jax.experimental import pallas as pl
from jax.experimental.pallas import tpu as pltpu


def make_resblock_kernel(H, KWC):
    """Kernel on (H, k*W*C) slabs; kw taps + channel mixing folded into M1/M2."""

    def kernel(x_ref, m1_ref, b1_ref, m2_ref, b2_ref, o_ref, xpad_ref, hpad_ref):
        # x_ref block: (1, H, KWC); m*_ref: (3, KWC, KWC); b*_ref: (1, KWC)
        x2d = x_ref[0]                                   # (H, KWC)

        zrow = jnp.zeros((1, KWC), jnp.float32)

        # ---- zero-padded input rows (H-direction SAME padding) in VMEM scratch ----
        # Halo rows re-zeroed every step: scratch is per-core and uninitialized, and
        # with "parallel" semantics a program_id==0 guard is unsafe on megacore.
        xpad_ref[0:1, :] = zrow
        xpad_ref[H + 1:H + 2, :] = zrow
        xpad_ref[1:H + 1, :] = x2d

        # ---- conv1: 3 kh taps, each one lane-dense (H,KWC)@(KWC,KWC) MXU matmul ----
        acc1 = jnp.dot(xpad_ref[0:H, :], m1_ref[0],
                       preferred_element_type=jnp.float32)
        for kh in range(1, 3):
            acc1 = acc1 + jnp.dot(xpad_ref[kh:kh + H, :], m1_ref[kh],
                                  preferred_element_type=jnp.float32)
        h = jnp.maximum(acc1 + b1_ref[...], 0.0)         # bias once, then ReLU

        # ---- zero-ringed intermediate: conv2's halo sees zeros outside conv1 out ----
        hpad_ref[0:1, :] = zrow
        hpad_ref[H + 1:H + 2, :] = zrow
        hpad_ref[1:H + 1, :] = h

        # ---- conv2: 3 kh taps ----
        acc2 = jnp.dot(hpad_ref[0:H, :], m2_ref[0],
                       preferred_element_type=jnp.float32)
        for kh in range(1, 3):
            acc2 = acc2 + jnp.dot(hpad_ref[kh:kh + H, :], m2_ref[kh],
                                  preferred_element_type=jnp.float32)

        # ---- bias + residual add (same (H, KWC) layout) ----
        o_ref[0] = acc2 + b2_ref[...] + x2d

    return kernel


def fold_conv_weights(w_hwio, W, k_fold):
    """Fold kw taps + channel mixing of a 3x3 conv into 3 banded (W*Ci, W*Co)
    matrices, then block-diagonalize over k_fold images sharing the lane axis.

    M[kh][w'*Ci + ci, w*Co + co] = w_hwio[kh, w'-w+1, ci, co] if |w'-w| <= 1 else 0,
    which also encodes SAME padding along W (out-of-range w' rows simply absent).
    """
    _, _, Ci, Co = w_hwio.shape
    mats = []
    for kh in range(3):
        m = jnp.zeros((W * Ci, W * Co), jnp.float32)
        for kw in range(3):
            shift = jnp.eye(W, k=1 - kw, dtype=jnp.float32)      # 1 at [w+kw-1, w]
            m = m + jnp.kron(shift, w_hwio[kh, kw].astype(jnp.float32))
        if k_fold > 1:
            # Block diagonal: each folded image is convolved independently.
            m = jnp.kron(jnp.eye(k_fold, dtype=jnp.float32), m)
        mats.append(m)
    return jnp.stack(mats, axis=0)                               # (3, k*W*Ci, k*W*Co)


def _choose_fold(B, WC, lane_target=256, max_kwc=1024):
    """Pick how many images to fold onto the lane axis.

    Prefer the smallest divisor k of B with k*WC >= lane_target (lane/MXU dense while
    keeping the most grid steps for v7x's 2 TCs); otherwise pack as many as allowed.
    k*WC is capped so the (k*WC)^2 folded weights stay small in VMEM.
    """
    divisors = [k for k in range(1, B + 1)
                if B % k == 0 and k * WC <= max(max_kwc, WC)]
    dense = [k for k in divisors if k * WC >= lane_target]
    if dense:
        return min(dense)
    return max(divisors)


def resblock_pallas(x_nchw, w1_hwio, b1, w2_hwio, b2):
    """x_nchw: (B, C, H, W) float32. Conv weights in HWIO. Returns (B, C, H, W)."""
    B, C, H, W = x_nchw.shape
    C_out = w1_hwio.shape[-1]
    assert C == C_out, "residual add requires in_channels == out_channels"
    WC = W * C

    k = _choose_fold(B, WC)
    nb = B // k
    KWC = k * WC

    # NCHW -> (B/k, H, k*W*C): k images side by side on the lane axis, channels fastest.
    x_nhwc = jnp.transpose(x_nchw, (0, 2, 3, 1)).astype(jnp.float32)   # (B,H,W,C)
    x2 = (x_nhwc.reshape(nb, k, H, WC)
                .transpose(0, 2, 1, 3)
                .reshape(nb, H, KWC))

    # Host-side folding of conv weights / biases into lane-dense operands.
    M1 = fold_conv_weights(w1_hwio, W, k)                # (3, KWC, KWC)
    M2 = fold_conv_weights(w2_hwio, W, k)                # (3, KWC, KWC)
    b1t = jnp.tile(b1.astype(jnp.float32), W * k).reshape(1, KWC)
    b2t = jnp.tile(b2.astype(jnp.float32), W * k).reshape(1, KWC)

    kernel = make_resblock_kernel(H, KWC)

    def build(single_buffer_weights):
        # Grid-invariant weight/bias operands: single-buffer them when supported.
        wkw = dict(pipeline_mode=pl.Buffered(1)) if single_buffer_weights else {}
        return pl.pallas_call(
            kernel,
            out_shape=jax.ShapeDtypeStruct((nb, H, KWC), jnp.float32),
            grid_spec=pltpu.PrefetchScalarGridSpec(
                num_scalar_prefetch=0,
                grid=(nb,),
                in_specs=[
                    pl.BlockSpec((1, H, KWC), lambda b: (b, 0, 0)),
                    pl.BlockSpec((3, KWC, KWC), lambda b: (0, 0, 0), **wkw),
                    pl.BlockSpec((1, KWC), lambda b: (0, 0), **wkw),
                    pl.BlockSpec((3, KWC, KWC), lambda b: (0, 0, 0), **wkw),
                    pl.BlockSpec((1, KWC), lambda b: (0, 0), **wkw),
                ],
                out_specs=pl.BlockSpec((1, H, KWC), lambda b: (b, 0, 0)),
                scratch_shapes=[
                    pltpu.VMEM((H + 2, KWC), jnp.float32),   # zero-padded input rows
                    pltpu.VMEM((H + 2, KWC), jnp.float32),   # zero-ringed ReLU slab
                ],
            ),
            compiler_params=pltpu.CompilerParams(
                dimension_semantics=("parallel",),
                vmem_limit_bytes=32 * 1024 * 1024,
            ),
        )

    try:
        out2 = build(True)(x2, M1, b1t, M2, b2t)
    except Exception:
        # Fallback: some JAX versions reject Buffered(1); double-buffering the small
        # invariant weights only costs VMEM, not correctness.
        out2 = build(False)(x2, M1, b1t, M2, b2t)

    # (B/k, H, k*W*C) -> NCHW
    out = (out2.reshape(nb, H, k, W, C_out)
               .transpose(0, 2, 1, 3, 4)
               .reshape(B, H, W, C_out))
    return jnp.transpose(out, (0, 3, 1, 2))


def resblock_reference(x_nchw, w1_hwio, b1, w2_hwio, b2):
    """Pure-JAX reference matching PyTorch Conv2d semantics (NCHW, padding=1)."""
    w1_oihw = jnp.transpose(w1_hwio, (3, 2, 0, 1))
    w2_oihw = jnp.transpose(w2_hwio, (3, 2, 0, 1))
    dn = ("NCHW", "OIHW", "NCHW")
    out = lax.conv_general_dilated(x_nchw, w1_oihw, (1, 1), "SAME",
                                   dimension_numbers=dn)
    out = out + b1[None, :, None, None]
    out = jnp.maximum(out, 0.0)
    out = lax.conv_general_dilated(out, w2_oihw, (1, 1), "SAME",
                                   dimension_numbers=dn)
    out = out + b2[None, :, None, None]
    return out + x_nchw


if __name__ == "__main__":
    B, C, H, W = 2, 4, 16, 16   # in_channels == out_channels (residual add)
    key = jax.random.PRNGKey(0)
    kx, kw1, kb1, kw2, kb2 = jax.random.split(key, 5)

    x = jax.random.normal(kx, (B, C, H, W), dtype=jnp.float32)
    # Deterministic "init": small random weights (HWIO layout), shapes from nn.Conv2d(3x3).
    w1 = jax.random.normal(kw1, (3, 3, C, C), dtype=jnp.float32) * 0.1
    b1 = jax.random.normal(kb1, (C,), dtype=jnp.float32) * 0.1
    w2 = jax.random.normal(kw2, (3, 3, C, C), dtype=jnp.float32) * 0.1
    b2 = jax.random.normal(kb2, (C,), dtype=jnp.float32) * 0.1

    out = jax.block_until_ready(resblock_pallas(x, w1, b1, w2, b2))
    ref = jax.block_until_ready(resblock_reference(x, w1, b1, w2, b2))

    assert out.shape == (B, C, H, W)
    max_err = float(jnp.max(jnp.abs(out - ref)))
    assert jnp.allclose(out, ref, atol=1e-4, rtol=1e-4), \
        f"mismatch vs reference (max abs err {max_err})"

    print("KERNEL_OK")
</pallas_src>

<mosaic_0001>
module attributes {stable_mosaic.version = 11 : i64} {
  func.func @kernel(%arg0: i32, %arg1: memref<1x16x128xf32, #tpu.memory_space<vmem>>, %arg2: memref<3x128x128xf32, #tpu.memory_space<vmem>>, %arg3: memref<1x128xf32, #tpu.memory_space<vmem>>, %arg4: memref<3x128x128xf32, #tpu.memory_space<vmem>>, %arg5: memref<1x128xf32, #tpu.memory_space<vmem>>, %arg6: memref<1x16x128xf32, #tpu.memory_space<vmem>>, %arg7: memref<18x128xf32, #tpu.memory_space<vmem>>, %arg8: memref<18x128xf32, #tpu.memory_space<vmem>>) attributes {dimension_semantics = [#tpu.dimension_semantics<parallel>], iteration_bounds = array<i64: 1>, scalar_prefetch = 0 : i64, scratch_operands = 2 : i64, tpu.core_type = #tpu.core_type<tc>, window_params = [{transform_indices = @transform_0, window_bounds = array<i64: 1, 16, 128>}, {pipeline_mode = #tpu.pipeline_mode<synchronous>, transform_indices = @transform_1, window_bounds = array<i64: 3, 128, 128>}, {pipeline_mode = #tpu.pipeline_mode<synchronous>, transform_indices = @transform_2, window_bounds = array<i64: 1, 128>}, {pipeline_mode = #tpu.pipeline_mode<synchronous>, transform_indices = @transform_3, window_bounds = array<i64: 3, 128, 128>}, {pipeline_mode = #tpu.pipeline_mode<synchronous>, transform_indices = @transform_4, window_bounds = array<i64: 1, 128>}, {transform_indices = @transform_5, window_bounds = array<i64: 1, 16, 128>}]} {
    %c0 = arith.constant 0 : index
    %c0_0 = arith.constant 0 : index
    %c0_1 = arith.constant 0 : index
    %0 = vector.load %arg1[%c0, %c0_0, %c0_1] : memref<1x16x128xf32, #tpu.memory_space<vmem>>, vector<1x16x128xf32>
    %1 = vector.shape_cast %0 : vector<1x16x128xf32> to vector<16x128xf32>
    %cst = arith.constant 0.000000e+00 : f32
    %2 = vector.broadcast %cst : f32 to vector<1x128xf32>
    %c0_2 = arith.constant 0 : index
    %c0_3 = arith.constant 0 : index
    %3 = vector.load %arg7[%c0_2, %c0_3] : memref<18x128xf32, #tpu.memory_space<vmem>>, vector<1x128xf32>
    tpu.vector_store %arg7[%c0_2, %c0_3], %2 {strides = array<i32>} : memref<18x128xf32, #tpu.memory_space<vmem>>, vector<1x128xf32>,
    %c17 = arith.constant 17 : index
    %c0_4 = arith.constant 0 : index
    %4 = vector.load %arg7[%c17, %c0_4] : memref<18x128xf32, #tpu.memory_space<vmem>>, vector<1x128xf32>
    tpu.vector_store %arg7[%c17, %c0_4], %2 {strides = array<i32>} : memref<18x128xf32, #tpu.memory_space<vmem>>, vector<1x128xf32>,
    %c1 = arith.constant 1 : index
    %c0_5 = arith.constant 0 : index
    %5 = vector.load %arg7[%c1, %c0_5] : memref<18x128xf32, #tpu.memory_space<vmem>>, vector<16x128xf32>
    tpu.vector_store %arg7[%c1, %c0_5], %1 {strides = array<i32>} : memref<18x128xf32, #tpu.memory_space<vmem>>, vector<16x128xf32>,
    %c0_6 = arith.constant 0 : index
    %c0_7 = arith.constant 0 : index
    %6 = vector.load %arg7[%c0_6, %c0_7] : memref<18x128xf32, #tpu.memory_space<vmem>>, vector<16x128xf32>
    %c0_8 = arith.constant 0 : index
    %c0_9 = arith.constant 0 : index
    %c0_10 = arith.constant 0 : index
    %7 = vector.load %arg2[%c0_8, %c0_9, %c0_10] : memref<3x128x128xf32, #tpu.memory_space<vmem>>, vector<1x128x128xf32>
    %8 = vector.shape_cast %7 : vector<1x128x128xf32> to vector<128x128xf32>
    %cst_11 = arith.constant dense<0.000000e+00> : vector<16x128xf32>
    %9 = tpu.matmul %6, %8, %cst_11 {dimension_numbers = #tpu.dot_dimension_numbers<[1], [0], [0], [1], [0, 0, 1, 1], [], []>} : vector<16x128xf32>, vector<128x128xf32>, vector<16x128xf32> -> vector<16x128xf32>
    %c1_12 = arith.constant 1 : index
    %c0_13 = arith.constant 0 : index
    %10 = vector.load %arg7[%c1_12, %c0_13] : memref<18x128xf32, #tpu.memory_space<vmem>>, vector<16x128xf32>
    %c1_14 = arith.constant 1 : index
    %c0_15 = arith.constant 0 : index
    %c0_16 = arith.constant 0 : index
    %11 = vector.load %arg2[%c1_14, %c0_15, %c0_16] : memref<3x128x128xf32, #tpu.memory_space<vmem>>, vector<1x128x128xf32>
    %12 = vector.shape_cast %11 : vector<1x128x128xf32> to vector<128x128xf32>
    %cst_17 = arith.constant dense<0.000000e+00> : vector<16x128xf32>
    %13 = tpu.matmul %10, %12, %cst_17 {dimension_numbers = #tpu.dot_dimension_numbers<[1], [0], [0], [1], [0, 0, 1, 1], [], []>} : vector<16x128xf32>, vector<128x128xf32>, vector<16x128xf32> -> vector<16x128xf32>
    %14 = arith.addf %9, %13 : vector<16x128xf32>
    %c2 = arith.constant 2 : index
    %c0_18 = arith.constant 0 : index
    %15 = vector.load %arg7[%c2, %c0_18] : memref<18x128xf32, #tpu.memory_space<vmem>>, vector<16x128xf32>
    %c2_19 = arith.constant 2 : index
    %c0_20 = arith.constant 0 : index
    %c0_21 = arith.constant 0 : index
    %16 = vector.load %arg2[%c2_19, %c0_20, %c0_21] : memref<3x128x128xf32, #tpu.memory_space<vmem>>, vector<1x128x128xf32>
    %17 = vector.shape_cast %16 : vector<1x128x128xf32> to vector<128x128xf32>
    %cst_22 = arith.constant dense<0.000000e+00> : vector<16x128xf32>
    %18 = tpu.matmul %15, %17, %cst_22 {dimension_numbers = #tpu.dot_dimension_numbers<[1], [0], [0], [1], [0, 0, 1, 1], [], []>} : vector<16x128xf32>, vector<128x128xf32>, vector<16x128xf32> -> vector<16x128xf32>
    %19 = arith.addf %14, %18 : vector<16x128xf32>
    %c0_23 = arith.constant 0 : index
    %c0_24 = arith.constant 0 : index
    %20 = vector.load %arg3[%c0_23, %c0_24] : memref<1x128xf32, #tpu.memory_space<vmem>>, vector<1x128xf32>
    %21 = vector.broadcast %20 : vector<1x128xf32> to vector<16x128xf32>
    %22 = arith.addf %19, %21 : vector<16x128xf32>
    %cst_25 = arith.constant 0.000000e+00 : f32
    %23 = vector.broadcast %cst_25 : f32 to vector<16x128xf32>
    %24 = arith.maximumf %22, %23 : vector<16x128xf32>
    %c0_26 = arith.constant 0 : index
    %c0_27 = arith.constant 0 : index
    %25 = vector.load %arg8[%c0_26, %c0_27] : memref<18x128xf32, #tpu.memory_space<vmem>>, vector<1x128xf32>
    tpu.vector_store %arg8[%c0_26, %c0_27], %2 {strides = array<i32>} : memref<18x128xf32, #tpu.memory_space<vmem>>, vector<1x128xf32>,
    %c17_28 = arith.constant 17 : index
    %c0_29 = arith.constant 0 : index
    %26 = vector.load %arg8[%c17_28, %c0_29] : memref<18x128xf32, #tpu.memory_space<vmem>>, vector<1x128xf32>
    tpu.vector_store %arg8[%c17_28, %c0_29], %2 {strides = array<i32>} : memref<18x128xf32, #tpu.memory_space<vmem>>, vector<1x128xf32>,
    %c1_30 = arith.constant 1 : index
    %c0_31 = arith.constant 0 : index
    %27 = vector.load %arg8[%c1_30, %c0_31] : memref<18x128xf32, #tpu.memory_space<vmem>>, vector<16x128xf32>
    tpu.vector_store %arg8[%c1_30, %c0_31], %24 {strides = array<i32>} : memref<18x128xf32, #tpu.memory_space<vmem>>, vector<16x128xf32>,
    %c0_32 = arith.constant 0 : index
    %c0_33 = arith.constant 0 : index
    %28 = vector.load %arg8[%c0_32, %c0_33] : memref<18x128xf32, #tpu.memory_space<vmem>>, vector<16x128xf32>
    %c0_34 = arith.constant 0 : index
    %c0_35 = arith.constant 0 : index
    %c0_36 = arith.constant 0 : index
    %29 = vector.load %arg4[%c0_34, %c0_35, %c0_36] : memref<3x128x128xf32, #tpu.memory_space<vmem>>, vector<1x128x128xf32>
    %30 = vector.shape_cast %29 : vector<1x128x128xf32> to vector<128x128xf32>
    %cst_37 = arith.constant dense<0.000000e+00> : vector<16x128xf32>
    %31 = tpu.matmul %28, %30, %cst_37 {dimension_numbers = #tpu.dot_dimension_numbers<[1], [0], [0], [1], [0, 0, 1, 1], [], []>} : vector<16x128xf32>, vector<128x128xf32>, vector<16x128xf32> -> vector<16x128xf32>
    %c1_38 = arith.constant 1 : index
    %c0_39 = arith.constant 0 : index
    %32 = vector.load %arg8[%c1_38, %c0_39] : memref<18x128xf32, #tpu.memory_space<vmem>>, vector<16x128xf32>
    %c1_40 = arith.constant 1 : index
    %c0_41 = arith.constant 0 : index
    %c0_42 = arith.constant 0 : index
    %33 = vector.load %arg4[%c1_40, %c0_41, %c0_42] : memref<3x128x128xf32, #tpu.memory_space<vmem>>, vector<1x128x128xf32>
    %34 = vector.shape_cast %33 : vector<1x128x128xf32> to vector<128x128xf32>
    %cst_43 = arith.constant dense<0.000000e+00> : vector<16x128xf32>
    %35 = tpu.matmul %32, %34, %cst_43 {dimension_numbers = #tpu.dot_dimension_numbers<[1], [0], [0], [1], [0, 0, 1, 1], [], []>} : vector<16x128xf32>, vector<128x128xf32>, vector<16x128xf32> -> vector<16x128xf32>
    %36 = arith.addf %31, %35 : vector<16x128xf32>
    %c2_44 = arith.constant 2 : index
    %c0_45 = arith.constant 0 : index
    %37 = vector.load %arg8[%c2_44, %c0_45] : memref<18x128xf32, #tpu.memory_space<vmem>>, vector<16x128xf32>
    %c2_46 = arith.constant 2 : index
    %c0_47 = arith.constant 0 : index
    %c0_48 = arith.constant 0 : index
    %38 = vector.load %arg4[%c2_46, %c0_47, %c0_48] : memref<3x128x128xf32, #tpu.memory_space<vmem>>, vector<1x128x128xf32>
    %39 = vector.shape_cast %38 : vector<1x128x128xf32> to vector<128x128xf32>
    %cst_49 = arith.constant dense<0.000000e+00> : vector<16x128xf32>
    %40 = tpu.matmul %37, %39, %cst_49 {dimension_numbers = #tpu.dot_dimension_numbers<[1], [0], [0], [1], [0, 0, 1, 1], [], []>} : vector<16x128xf32>, vector<128x128xf32>, vector<16x128xf32> -> vector<16x128xf32>
    %41 = arith.addf %36, %40 : vector<16x128xf32>
    %c0_50 = arith.constant 0 : index
    %c0_51 = arith.constant 0 : index
    %42 = vector.load %arg5[%c0_50, %c0_51] : memref<1x128xf32, #tpu.memory_space<vmem>>, vector<1x128xf32>
    %43 = vector.broadcast %42 : vector<1x128xf32> to vector<16x128xf32>
    %44 = arith.addf %41, %43 : vector<16x128xf32>
    %45 = arith.addf %44, %1 : vector<16x128xf32>
    %c0_52 = arith.constant 0 : index
    %c0_53 = arith.constant 0 : index
    %c0_54 = arith.constant 0 : index
    %46 = vector.load %arg6[%c0_52, %c0_53, %c0_54] : memref<1x16x128xf32, #tpu.memory_space<vmem>>, vector<1x16x128xf32>
    %47 = vector.shape_cast %46 : vector<1x16x128xf32> to vector<16x128xf32>
    %48 = vector.shape_cast %45 : vector<16x128xf32> to vector<1x16x128xf32>
    tpu.vector_store %arg6[%c0_52, %c0_53, %c0_54], %48 {strides = array<i32>} : memref<1x16x128xf32, #tpu.memory_space<vmem>>, vector<1x16x128xf32>,
    return
  }
  func.func @transform_0(%arg0: i32) -> (i32, i32, i32) {
    %c0_i32 = arith.constant 0 : i32
    %c0_i32_0 = arith.constant 0 : i32
    %c0_i32_1 = arith.constant 0 : i32
    return %arg0, %c0_i32, %c0_i32_0 : i32, i32, i32
  }
  func.func @transform_1(%arg0: i32) -> (i32, i32, i32) {
    %c0_i32 = arith.constant 0 : i32
    %c0_i32_0 = arith.constant 0 : i32
    %c0_i32_1 = arith.constant 0 : i32
    %c0_i32_2 = arith.constant 0 : i32
    return %c0_i32, %c0_i32_0, %c0_i32_1 : i32, i32, i32
  }
  func.func @transform_2(%arg0: i32) -> (i32, i32) {
    %c0_i32 = arith.constant 0 : i32
    %c0_i32_0 = arith.constant 0 : i32
    %c0_i32_1 = arith.constant 0 : i32
    return %c0_i32, %c0_i32_0 : i32, i32
  }
  func.func @transform_3(%arg0: i32) -> (i32, i32, i32) {
    %c0_i32 = arith.constant 0 : i32
    %c0_i32_0 = arith.constant 0 : i32
    %c0_i32_1 = arith.constant 0 : i32
    %c0_i32_2 = arith.constant 0 : i32
    return %c0_i32, %c0_i32_0, %c0_i32_1 : i32, i32, i32
  }
  func.func @transform_4(%arg0: i32) -> (i32, i32) {
    %c0_i32 = arith.constant 0 : i32
    %c0_i32_0 = arith.constant 0 : i32
    %c0_i32_1 = arith.constant 0 : i32
    return %c0_i32, %c0_i32_0 : i32, i32
  }
  func.func @transform_5(%arg0: i32) -> (i32, i32, i32) {
    %c0_i32 = arith.constant 0 : i32
    %c0_i32_0 = arith.constant 0 : i32
    %c0_i32_1 = arith.constant 0 : i32
    return %arg0, %c0_i32, %c0_i32_0 : i32, i32, i32
  }
}

module attributes {stable_mosaic.version = 11 : i64} {
  func.func @kernel(%arg0: i32, %arg1: memref<1x16x128xf32, #tpu.memory_space<vmem>>, %arg2: memref<3x128x128xf32, #tpu.memory_space<vmem>>, %arg3: memref<1x128xf32, #tpu.memory_space<vmem>>, %arg4: memref<3x128x128xf32, #tpu.memory_space<vmem>>, %arg5: memref<1x128xf32, #tpu.memory_space<vmem>>, %arg6: memref<1x16x128xf32, #tpu.memory_space<vmem>>, %arg7: memref<18x128xf32, #tpu.memory_space<vmem>>, %arg8: memref<18x128xf32, #tpu.memory_space<vmem>>) attributes {dimension_semantics = [#tpu.dimension_semantics<parallel>], iteration_bounds = array<i64: 1>, scalar_prefetch = 0 : i64, scratch_operands = 2 : i64, tpu.core_type = #tpu.core_type<tc>, window_params = [{transform_indices = @transform_0, window_bounds = array<i64: 1, 16, 128>}, {pipeline_mode = #tpu.pipeline_mode<synchronous>, transform_indices = @transform_1, window_bounds = array<i64: 3, 128, 128>}, {pipeline_mode = #tpu.pipeline_mode<synchronous>, transform_indices = @transform_2, window_bounds = array<i64: 1, 128>}, {pipeline_mode = #tpu.pipeline_mode<synchronous>, transform_indices = @transform_3, window_bounds = array<i64: 3, 128, 128>}, {pipeline_mode = #tpu.pipeline_mode<synchronous>, transform_indices = @transform_4, window_bounds = array<i64: 1, 128>}, {transform_indices = @transform_5, window_bounds = array<i64: 1, 16, 128>}]} {
    %c0 = arith.constant 0 : index
    %c0_0 = arith.constant 0 : index
    %c0_1 = arith.constant 0 : index
    %0 = vector.load %arg1[%c0, %c0_0, %c0_1] : memref<1x16x128xf32, #tpu.memory_space<vmem>>, vector<1x16x128xf32>
    %1 = vector.shape_cast %0 : vector<1x16x128xf32> to vector<16x128xf32>
    %cst = arith.constant 0.000000e+00 : f32
    %2 = vector.broadcast %cst : f32 to vector<1x128xf32>
    %c0_2 = arith.constant 0 : index
    %c0_3 = arith.constant 0 : index
    %3 = vector.load %arg7[%c0_2, %c0_3] : memref<18x128xf32, #tpu.memory_space<vmem>>, vector<1x128xf32>
    tpu.vector_store %arg7[%c0_2, %c0_3], %2 {strides = array<i32>} : memref<18x128xf32, #tpu.memory_space<vmem>>, vector<1x128xf32>,
    %c17 = arith.constant 17 : index
    %c0_4 = arith.constant 0 : index
    %4 = vector.load %arg7[%c17, %c0_4] : memref<18x128xf32, #tpu.memory_space<vmem>>, vector<1x128xf32>
    tpu.vector_store %arg7[%c17, %c0_4], %2 {strides = array<i32>} : memref<18x128xf32, #tpu.memory_space<vmem>>, vector<1x128xf32>,
    %c1 = arith.constant 1 : index
    %c0_5 = arith.constant 0 : index
    %5 = vector.load %arg7[%c1, %c0_5] : memref<18x128xf32, #tpu.memory_space<vmem>>, vector<16x128xf32>
    tpu.vector_store %arg7[%c1, %c0_5], %1 {strides = array<i32>} : memref<18x128xf32, #tpu.memory_space<vmem>>, vector<16x128xf32>,
    %c0_6 = arith.constant 0 : index
    %c0_7 = arith.constant 0 : index
    %6 = vector.load %arg7[%c0_6, %c0_7] : memref<18x128xf32, #tpu.memory_space<vmem>>, vector<16x128xf32>
    %c0_8 = arith.constant 0 : index
    %c0_9 = arith.constant 0 : index
    %c0_10 = arith.constant 0 : index
    %7 = vector.load %arg2[%c0_8, %c0_9, %c0_10] : memref<3x128x128xf32, #tpu.memory_space<vmem>>, vector<1x128x128xf32>
    %8 = vector.shape_cast %7 : vector<1x128x128xf32> to vector<128x128xf32>
    %cst_11 = arith.constant dense<0.000000e+00> : vector<16x128xf32>
    %9 = tpu.matmul %6, %8, %cst_11 {dimension_numbers = #tpu.dot_dimension_numbers<[1], [0], [0], [1], [0, 0, 1, 1], [], []>} : vector<16x128xf32>, vector<128x128xf32>, vector<16x128xf32> -> vector<16x128xf32>
    %c1_12 = arith.constant 1 : index
    %c0_13 = arith.constant 0 : index
    %10 = vector.load %arg7[%c1_12, %c0_13] : memref<18x128xf32, #tpu.memory_space<vmem>>, vector<16x128xf32>
    %c1_14 = arith.constant 1 : index
    %c0_15 = arith.constant 0 : index
    %c0_16 = arith.constant 0 : index
    %11 = vector.load %arg2[%c1_14, %c0_15, %c0_16] : memref<3x128x128xf32, #tpu.memory_space<vmem>>, vector<1x128x128xf32>
    %12 = vector.shape_cast %11 : vector<1x128x128xf32> to vector<128x128xf32>
    %cst_17 = arith.constant dense<0.000000e+00> : vector<16x128xf32>
    %13 = tpu.matmul %10, %12, %cst_17 {dimension_numbers = #tpu.dot_dimension_numbers<[1], [0], [0], [1], [0, 0, 1, 1], [], []>} : vector<16x128xf32>, vector<128x128xf32>, vector<16x128xf32> -> vector<16x128xf32>
    %14 = arith.addf %9, %13 : vector<16x128xf32>
    %c2 = arith.constant 2 : index
    %c0_18 = arith.constant 0 : index
    %15 = vector.load %arg7[%c2, %c0_18] : memref<18x128xf32, #tpu.memory_space<vmem>>, vector<16x128xf32>
    %c2_19 = arith.constant 2 : index
    %c0_20 = arith.constant 0 : index
    %c0_21 = arith.constant 0 : index
    %16 = vector.load %arg2[%c2_19, %c0_20, %c0_21] : memref<3x128x128xf32, #tpu.memory_space<vmem>>, vector<1x128x128xf32>
    %17 = vector.shape_cast %16 : vector<1x128x128xf32> to vector<128x128xf32>
    %cst_22 = arith.constant dense<0.000000e+00> : vector<16x128xf32>
    %18 = tpu.matmul %15, %17, %cst_22 {dimension_numbers = #tpu.dot_dimension_numbers<[1], [0], [0], [1], [0, 0, 1, 1], [], []>} : vector<16x128xf32>, vector<128x128xf32>, vector<16x128xf32> -> vector<16x128xf32>
    %19 = arith.addf %14, %18 : vector<16x128xf32>
    %c0_23 = arith.constant 0 : index
    %c0_24 = arith.constant 0 : index
    %20 = vector.load %arg3[%c0_23, %c0_24] : memref<1x128xf32, #tpu.memory_space<vmem>>, vector<1x128xf32>
    %21 = vector.broadcast %20 : vector<1x128xf32> to vector<16x128xf32>
    %22 = arith.addf %19, %21 : vector<16x128xf32>
    %cst_25 = arith.constant 0.000000e+00 : f32
    %23 = vector.broadcast %cst_25 : f32 to vector<16x128xf32>
    %24 = arith.maximumf %22, %23 : vector<16x128xf32>
    %c0_26 = arith.constant 0 : index
    %c0_27 = arith.constant 0 : index
    %25 = vector.load %arg8[%c0_26, %c0_27] : memref<18x128xf32, #tpu.memory_space<vmem>>, vector<1x128xf32>
    tpu.vector_store %arg8[%c0_26, %c0_27], %2 {strides = array<i32>} : memref<18x128xf32, #tpu.memory_space<vmem>>, vector<1x128xf32>,
    %c17_28 = arith.constant 17 : index
    %c0_29 = arith.constant 0 : index
    %26 = vector.load %arg8[%c17_28, %c0_29] : memref<18x128xf32, #tpu.memory_space<vmem>>, vector<1x128xf32>
    tpu.vector_store %arg8[%c17_28, %c0_29], %2 {strides = array<i32>} : memref<18x128xf32, #tpu.memory_space<vmem>>, vector<1x128xf32>,
    %c1_30 = arith.constant 1 : index
    %c0_31 = arith.constant 0 : index
    %27 = vector.load %arg8[%c1_30, %c0_31] : memref<18x128xf32, #tpu.memory_space<vmem>>, vector<16x128xf32>
    tpu.vector_store %arg8[%c1_30, %c0_31], %24 {strides = array<i32>} : memref<18x128xf32, #tpu.memory_space<vmem>>, vector<16x128xf32>,
    %c0_32 = arith.constant 0 : index
    %c0_33 = arith.constant 0 : index
    %28 = vector.load %arg8[%c0_32, %c0_33] : memref<18x128xf32, #tpu.memory_space<vmem>>, vector<16x128xf32>
    %c0_34 = arith.constant 0 : index
    %c0_35 = arith.constant 0 : index
    %c0_36 = arith.constant 0 : index
    %29 = vector.load %arg4[%c0_34, %c0_35, %c0_36] : memref<3x128x128xf32, #tpu.memory_space<vmem>>, vector<1x128x128xf32>
    %30 = vector.shape_cast %29 : vector<1x128x128xf32> to vector<128x128xf32>
    %cst_37 = arith.constant dense<0.000000e+00> : vector<16x128xf32>
    %31 = tpu.matmul %28, %30, %cst_37 {dimension_numbers = #tpu.dot_dimension_numbers<[1], [0], [0], [1], [0, 0, 1, 1], [], []>} : vector<16x128xf32>, vector<128x128xf32>, vector<16x128xf32> -> vector<16x128xf32>
    %c1_38 = arith.constant 1 : index
    %c0_39 = arith.constant 0 : index
    %32 = vector.load %arg8[%c1_38, %c0_39] : memref<18x128xf32, #tpu.memory_space<vmem>>, vector<16x128xf32>
    %c1_40 = arith.constant 1 : index
    %c0_41 = arith.constant 0 : index
    %c0_42 = arith.constant 0 : index
    %33 = vector.load %arg4[%c1_40, %c0_41, %c0_42] : memref<3x128x128xf32, #tpu.memory_space<vmem>>, vector<1x128x128xf32>
    %34 = vector.shape_cast %33 : vector<1x128x128xf32> to vector<128x128xf32>
    %cst_43 = arith.constant dense<0.000000e+00> : vector<16x128xf32>
    %35 = tpu.matmul %32, %34, %cst_43 {dimension_numbers = #tpu.dot_dimension_numbers<[1], [0], [0], [1], [0, 0, 1, 1], [], []>} : vector<16x128xf32>, vector<128x128xf32>, vector<16x128xf32> -> vector<16x128xf32>
    %36 = arith.addf %31, %35 : vector<16x128xf32>
    %c2_44 = arith.constant 2 : index
    %c0_45 = arith.constant 0 : index
    %37 = vector.load %arg8[%c2_44, %c0_45] : memref<18x128xf32, #tpu.memory_space<vmem>>, vector<16x128xf32>
    %c2_46 = arith.constant 2 : index
    %c0_47 = arith.constant 0 : index
    %c0_48 = arith.constant 0 : index
    %38 = vector.load %arg4[%c2_46, %c0_47, %c0_48] : memref<3x128x128xf32, #tpu.memory_space<vmem>>, vector<1x128x128xf32>
    %39 = vector.shape_cast %38 : vector<1x128x128xf32> to vector<128x128xf32>
    %cst_49 = arith.constant dense<0.000000e+00> : vector<16x128xf32>
    %40 = tpu.matmul %37, %39, %cst_49 {dimension_numbers = #tpu.dot_dimension_numbers<[1], [0], [0], [1], [0, 0, 1, 1], [], []>} : vector<16x128xf32>, vector<128x128xf32>, vector<16x128xf32> -> vector<16x128xf32>
    %41 = arith.addf %36, %40 : vector<16x128xf32>
    %c0_50 = arith.constant 0 : index
    %c0_51 = arith.constant 0 : index
    %42 = vector.load %arg5[%c0_50, %c0_51] : memref<1x128xf32, #tpu.memory_space<vmem>>, vector<1x128xf32>
    %43 = vector.broadcast %42 : vector<1x128xf32> to vector<16x128xf32>
    %44 = arith.addf %41, %43 : vector<16x128xf32>
    %45 = arith.addf %44, %1 : vector<16x128xf32>
    %c0_52 = arith.constant 0 : index
    %c0_53 = arith.constant 0 : index
    %c0_54 = arith.constant 0 : index
    %46 = vector.load %arg6[%c0_52, %c0_53, %c0_54] : memref<1x16x128xf32, #tpu.memory_space<vmem>>, vector<1x16x128xf32>
    %47 = vector.shape_cast %46 : vector<1x16x128xf32> to vector<16x128xf32>
    %48 = vector.shape_cast %45 : vector<16x128xf32> to vector<1x16x128xf32>
    tpu.vector_store %arg6[%c0_52, %c0_53, %c0_54], %48 {strides = array<i32>} : memref<1x16x128xf32, #tpu.memory_space<vmem>>, vector<1x16x128xf32>,
    return
  }
  func.func @transform_0(%arg0: i32) -> (i32, i32, i32) {
    %c0_i32 = arith.constant 0 : i32
    %c0_i32_0 = arith.constant 0 : i32
    %c0_i32_1 = arith.constant 0 : i32
    return %arg0, %c0_i32, %c0_i32_0 : i32, i32, i32
  }
  func.func @transform_1(%arg0: i32) -> (i32, i32, i32) {
    %c0_i32 = arith.constant 0 : i32
    %c0_i32_0 = arith.constant 0 : i32
    %c0_i32_1 = arith.constant 0 : i32
    %c0_i32_2 = arith.constant 0 : i32
    return %c0_i32, %c0_i32_0, %c0_i32_1 : i32, i32, i32
  }
  func.func @transform_2(%arg0: i32) -> (i32, i32) {
    %c0_i32 = arith.constant 0 : i32
    %c0_i32_0 = arith.constant 0 : i32
    %c0_i32_1 = arith.constant 0 : i32
    return %c0_i32, %c0_i32_0 : i32, i32
  }
  func.func @transform_3(%arg0: i32) -> (i32, i32, i32) {
    %c0_i32 = arith.constant 0 : i32
    %c0_i32_0 = arith.constant 0 : i32
    %c0_i32_1 = arith.constant 0 : i32
    %c0_i32_2 = arith.constant 0 : i32
    return %c0_i32, %c0_i32_0, %c0_i32_1 : i32, i32, i32
  }
  func.func @transform_4(%arg0: i32) -> (i32, i32) {
    %c0_i32 = arith.constant 0 : i32
    %c0_i32_0 = arith.constant 0 : i32
    %c0_i32_1 = arith.constant 0 : i32
    return %c0_i32, %c0_i32_0 : i32, i32
  }
  func.func @transform_5(%arg0: i32) -> (i32, i32, i32) {
    %c0_i32 = arith.constant 0 : i32
    %c0_i32_0 = arith.constant 0 : i32
    %c0_i32_1 = arith.constant 0 : i32
    return %arg0, %c0_i32, %c0_i32_0 : i32, i32, i32
  }
}

</mosaic_0001>

<bundles_post_ra>
// kernel: tpu_custom_call.1
= control target key start
LH: loop header
LB: loop body
LE: loop exit
PB: predicated region body
PF: predicated region fallthrough
CT: control target
= control target key end

     0   :  { %10 = vsyncpa [#allocation5], 0  ;;  %s1421_s0 = inlined_call_operand.hbm [shape: f32[1,16,128], index: 0, kind: input, shape index: {}]   ;;  %s1422_s1 = inlined_call_operand.hbm [shape: f32[3,128,128], index: 1, kind: input, shape index: {}]   ;;  %s1423_s2 = inlined_call_operand.vmem [shape: f32[1,128], index: 2, kind: input, shape index: {}]   ;;  %s1424_s3 = inlined_call_operand.hbm [shape: f32[3,128,128], index: 3, kind: input, shape index: {}]   ;;  %s1425_s4 = inlined_call_operand.vmem [shape: f32[1,128], index: 4, kind: input, shape index: {}]   ;;  %s1426_s5 = inlined_call_operand.hbm [shape: f32[1,16,128], index: 5, kind: output, shape index: {}]  }
   0x1   :  { %11 = vsyncpa [#allocation8], 0 }
   0x2   :  { %12 = vsyncpa [#allocation6], 0  ;;  %s1301_s18 = smov [#allocation7]   ;;  %s1302_s20 = smov [#allocation4]  }
   0x3   :  { %s30_s19 = sshll.u32 %s1301_s18, 4  ;;  %s18_s21 = sshll.u32 %s1302_s20, 4  ;;  %s31_s19 = int_to_ptr.vmem [resolvable:$true] %s30_s19  ;;  %s1338_s21 = int_to_ptr.vmem [resolvable:$true] %s18_s21 }
   0x4   :  { %s1207_s24 = scalar_lea.hbm %s1422_s1, 6144 }
   0x5   :  { %p1208_p0 = scmp.ne.s32.totalorder %s1422_s1, %s1207_s24  ;;  %p1211_p1 = scmp.lt.u32.totalorder %s1207_s24, %s1422_s1 }
   0x7   :  { %p1213_p2 = pnand %p1211_p1, %p1208_p0 }
   0x9   :  { %1216 = shalt.err (!%p1213_p2)
}
   0xa   :  { %s1217_s29 = scalar_lea.vmem %s31_s19, 6144  ;;  %p1222_p4 = scmp.lt.s32.totalorder %s31_s19, %s31_s19 }
   0xb   :  { %p1218_p3 = scmp.ne.s32.totalorder %s31_s19, %s1217_s29  ;;  %p1223_p5 = scmp.lt.s32.totalorder %s1217_s29, %s1217_s29 }
   0xd   :  { %p1224_p6 = por %p1223_p5, %p1222_p4 }
   0xf   :  { %p1225_p7 = pnand %p1224_p6, %p1218_p3 }
  0x11   :  { %1228 = shalt.err (!%p1225_p7)
}
  0x12   :  { %s1303_s30 = smov 128   ;;  %s1304_s6 = smov 8  }
  0x13   :  { %36 = dma.hbm_to_vmem [thread:$0]  %s1422_s1, 6144, %s31_s19, [#allocation8], %s1303_s30, %s1303_s30, %s1304_s6  }
  0x14   :  { %s1229_s11 = scalar_lea.hbm %s1421_s0, 256 }
  0x15   :  { %p1230_p8 = scmp.ne.s32.totalorder %s1421_s0, %s1229_s11  ;;  %p1233_p9 = scmp.lt.u32.totalorder %s1229_s11, %s1421_s0 }
  0x17   :  { %p1235_p10 = pnand %p1233_p9, %p1230_p8 }
  0x19   :  { %1238 = shalt.err (!%p1235_p10)
}
  0x1a   :  { %s1239_s16 = scalar_lea.vmem %s1338_s21, 256  ;;  %p1244_p12 = scmp.lt.s32.totalorder %s1338_s21, %s1338_s21 }
  0x1b   :  { %p1240_p11 = scmp.ne.s32.totalorder %s1338_s21, %s1239_s16  ;;  %p1245_p13 = scmp.lt.s32.totalorder %s1239_s16, %s1239_s16 }
  0x1d   :  { %p1246_p0 = por %p1245_p13, %p1244_p12 }
  0x1f   :  { %p1247_p1 = pnand %p1246_p0, %p1240_p11 }
  0x21   :  { %1250 = shalt.err (!%p1247_p1)
}
  0x22   :  { %24 = dma.hbm_to_vmem [thread:$0]  %s1421_s0, 256, %s1338_s21, [#allocation5], %s1303_s30, %s1303_s30, %s1304_s6  }
  0x23   :  { %s1305_s18 = smov [#allocation9]   ;;  %s1251_s23 = scalar_lea.hbm %s1424_s3, 6144 }
  0x24   :  { %s44_s19 = sshll.u32 %s1305_s18, 4  ;;  %p1252_p2 = scmp.ne.s32.totalorder %s1424_s3, %s1251_s23  ;;  %s45_s19 = int_to_ptr.vmem [resolvable:$true] %s44_s19 }
  0x25   :  { %p1255_p3 = scmp.lt.u32.totalorder %s1251_s23, %s1424_s3 }
  0x27   :  { %p1257_p4 = pnand %p1255_p3, %p1252_p2 }
  0x29   :  { %1260 = shalt.err (!%p1257_p4)
}
  0x2a   :  { %s1261_s28 = scalar_lea.vmem %s45_s19, 6144  ;;  %p1266_p6 = scmp.lt.s32.totalorder %s45_s19, %s45_s19 }
  0x2b   :  { %p1262_p5 = scmp.ne.s32.totalorder %s45_s19, %s1261_s28  ;;  %p1267_p7 = scmp.lt.s32.totalorder %s1261_s28, %s1261_s28 }
  0x2d   :  { %p1268_p8 = por %p1267_p7, %p1266_p6 }
  0x2f   :  { %p1269_p9 = pnand %p1268_p8, %p1262_p5 }
  0x31   :  { %1272 = shalt.err (!%p1269_p9)
}
  0x32   :  { %50 = dma.hbm_to_vmem [thread:$0]  %s1424_s3, 6144, %s45_s19, [#allocation8], %s1303_s30, %s1303_s30, %s1304_s6  }
  0x33   :  { %1295 = dma.done.wait [#allocation5], 256  }
  0x34   :  { %1296 = vsyncadd [#allocation5], 4294967040 }
  0x35   :  { %1297 = dma.done.wait [#allocation8], 12288  }
  0x36   :  { %1298 = vsyncadd [#allocation8], 4294955008  ;;  %v1306_v0 = vmov 0.0   ;;  %v89_v1 = vld [vmem:[#allocation7 + $0x80] sm:$0xff]  ;;  %v90_v2 = vld [vmem:[#allocation7 + $0x88] sm:$0xff]  ;;  %s1307_s8 = smov [#allocation10]  }
  0x37   :  { %64 = vst [vmem:[#allocation2] sm:$0x1] %v1306_v0  ;;  %65 = vst [vmem:[#allocation2 + $0x11] sm:$0x1] %v1306_v0  ;;  %v91_v3 = vld [vmem:[#allocation7 + $0x90] sm:$0xff]  ;;  %v1000_v4 = vpack.c.bf16 %v90_v2, %v89_v1  ;;  %v92_v5 = vld [vmem:[#allocation7 + $0x98] sm:$0xff] }
  0x38   :  { %362 = vst [vmem:[#allocation3] sm:$0x1] %v1306_v0  ;;  %363 = vst [vmem:[#allocation3 + $0x11] sm:$0x1] %v1306_v0  ;;  %v1004_v6 = vpack.c.bf16 %v92_v5, %v91_v3  ;;  %v93_v7 = vld [vmem:[#allocation7 + $0xa0] sm:$0xff]  ;;  %v94_v8 = vld [vmem:[#allocation7 + $0xa8] sm:$0xff] }
  0x39   :  { %1001 = vmatprep.subr.bf16.mxu0 %v1000_v4  ;;  %v1008_v9 = vpack.c.bf16 %v94_v8, %v93_v7  ;;  %v1390_v10 = vld [vmem:[#allocation4] sm:$0xff]  ;;  %v96_v12 = vld [vmem:[#allocation7 + $0xb8] sm:$0xff]  ;;  %v97_v15 = vld [vmem:[#allocation7 + $0xc0] sm:$0xff]  ;;  %s667_s9 = sshll.u32 %s1307_s8, 4  ;;  %s668_s9 = int_to_ptr.vmem [resolvable:$true] %s667_s9 }
  0x3a   :  { %1003 = vmatpush3.bf16.msra.mxu0 %v1000_v4  ;;  %v95_v11 = vld [vmem:[#allocation7 + $0xb0] sm:$0xff]  ;;  %66 = vst [vmem:[#allocation2 + $0x1] sm:$0xff] %v1390_v10  ;;  %822 = vmatprep.mubr.f32.mxu0 %v1390_v10  ;;  %v1394_v13 = vld [vmem:[#allocation4 + $0x8] sm:$0xff]  ;;  %v98_v16 = vld [vmem:[#allocation7 + $0xc8] sm:$0xff]  ;;  %s1273_s10 = scalar_lea.vmem %s668_s9, 256  ;;  %p1278_p11 = scmp.lt.s32.totalorder %s668_s9, %s668_s9 }
  0x3b   :  { %1005 = vmatprep.subr.bf16.mxu0 %v1004_v6  ;;  %67 = vst [vmem:[#allocation2 + $0x9] sm:$0xff] %v1394_v13  ;;  %v1012_v14 = vpack.c.bf16 %v96_v12, %v95_v11  ;;  %v1016_v17 = vpack.c.bf16 %v98_v16, %v97_v15  ;;  %v99_v18 = vld [vmem:[#allocation7 + $0xd0] sm:$0xff]  ;;  %v100_v19 = vld [vmem:[#allocation7 + $0xd8] sm:$0xff]  ;;  %v101_v21 = vld [vmem:[#allocation7 + $0xe0] sm:$0xff]  ;;  %p1274_p10 = scmp.ne.s32.totalorder %s668_s9, %s1273_s10  ;;  %p1279_p12 = scmp.lt.s32.totalorder %s1273_s10, %s1273_s10 }
  0x3c   :  { %v1020_v20 = vpack.c.bf16 %v100_v19, %v99_v18  ;;  %v102_v22 = vld [vmem:[#allocation7 + $0xe8] sm:$0xff]  ;;  %v387_v23 = vld [vmem:[#allocation9 + $0x80] sm:$0xff]  ;;  %v389_v25 = vld [vmem:[#allocation9 + $0x90] sm:$0xff] }
  0x3d   :  { %v388_v24 = vld [vmem:[#allocation9 + $0x88] sm:$0xff]  ;;  %v390_v27 = vld [vmem:[#allocation9 + $0x98] sm:$0xff]  ;;  %v391_v29 = vld [vmem:[#allocation9 + $0xa0] sm:$0xff]  ;;  %v1024_v31 = vpack.c.bf16 %v102_v22, %v101_v21  ;;  %p1280_p13 = por %p1279_p12, %p1278_p11 }
  0x3e   :  { %1007 = vmatpush3.bf16.msra.mxu0 %v1004_v6  ;;  %v1096_v26 = vpack.c.bf16 %v388_v24, %v387_v23  ;;  %v1100_v28 = vpack.c.bf16 %v390_v27, %v389_v25  ;;  %v392_v30 = vld [vmem:[#allocation9 + $0xa8] sm:$0xff]  ;;  %v103_v32 = vld [vmem:[#allocation7 + $0xf0] sm:$0xff]  ;;  %v104_v33 = vld [vmem:[#allocation7 + $0xf8] sm:$0xff] }
  0x3f   :  { %1009 = vmatprep.subr.bf16.mxu0 %v1008_v9  ;;  %v1104_v34 = vpack.c.bf16 %v392_v30, %v391_v29  ;;  %v393_v35 = vld [vmem:[#allocation9 + $0xb0] sm:$0xff]  ;;  %v394_v36 = vld [vmem:[#allocation9 + $0xb8] sm:$0xff]  ;;  %v1028_v37 = vpack.c.bf16 %v104_v33, %v103_v32  ;;  %v70_v38 = vld [vmem:[#allocation7] sm:$0xff]  ;;  %p1281_p0 = pnand %p1280_p13, %p1274_p10 }
  0x40   :  { %1097 = vmatprep.subr.bf16.mxu1 %v1096_v26  ;;  %v71_v39 = vld [vmem:[#allocation7 + $0x8] sm:$0xff]  ;;  %v1108_v40 = vpack.c.bf16 %v394_v36, %v393_v35  ;;  %v395_v41 = vld [vmem:[#allocation9 + $0xc0] sm:$0xff]  ;;  %v72_v44 = vld [vmem:[#allocation7 + $0x10] sm:$0xff] }
  0x41   :  { %1099 = vmatpush3.bf16.msra.mxu1 %v1096_v26  ;;  %v396_v42 = vld [vmem:[#allocation9 + $0xc8] sm:$0xff]  ;;  %v1032_v43 = vpack.c.bf16 %v71_v39, %v70_v38  ;;  %v73_v45 = vld [vmem:[#allocation7 + $0x18] sm:$0xff]  ;;  %v68_v48 = vld [vmem:[#allocation2] sm:$0xff] }
  0x42   :  { %1011 = vmatpush3.bf16.msra.mxu0 %v1008_v9  ;;  %1101 = vmatprep.subr.bf16.mxu1 %v1100_v28  ;;  %v1112_v46 = vpack.c.bf16 %v396_v42, %v395_v41  ;;  %v1036_v47 = vpack.c.bf16 %v73_v45, %v72_v44  ;;  %v74_v49 = vld [vmem:[#allocation7 + $0x20] sm:$0xff]  ;;  %v75_v50 = vld [vmem:[#allocation7 + $0x28] sm:$0xff]  ;;  %v76_v52 = vld [vmem:[#allocation7 + $0x30] sm:$0xff] }
  0x43   :  { %1013 = vmatprep.subr.bf16.mxu0 %v1012_v14  ;;  %v1040_v51 = vpack.c.bf16 %v75_v50, %v74_v49  ;;  %v77_v53 = vld [vmem:[#allocation7 + $0x38] sm:$0xff]  ;;  %v78_v55 = vld [vmem:[#allocation7 + $0x40] sm:$0xff]  ;;  %v79_v56 = vld [vmem:[#allocation7 + $0x48] sm:$0xff] }
  0x44   :  { %v1044_v54 = vpack.c.bf16 %v77_v53, %v76_v52  ;;  %v1048_v57 = vpack.c.bf16 %v79_v56, %v78_v55  ;;  %v80_v58 = vld [vmem:[#allocation7 + $0x50] sm:$0xff]  ;;  %v81_v59 = vld [vmem:[#allocation7 + $0x58] sm:$0xff]  ;;  %v82_v61 = vld [vmem:[#allocation7 + $0x60] sm:$0xff] }
  0x45   :  { %1103 = vmatpush3.bf16.msra.mxu1 %v1100_v28  ;;  %v1052_v60 = vpack.c.bf16 %v81_v59, %v80_v58  ;;  %v83_v62 = vld [vmem:[#allocation7 + $0x68] sm:$0xff]  ;;  %v84_v0 = vld [vmem:[#allocation7 + $0x70] sm:$0xff]  ;;  %v85_v1 = vld [vmem:[#allocation7 + $0x78] sm:$0xff] }
  0x46   :  { %1015 = vmatpush3.bf16.msra.mxu0 %v1012_v14  ;;  %1105 = vmatprep.subr.bf16.mxu1 %v1104_v34  ;;  %v1056_v63 = vpack.c.bf16 %v83_v62, %v82_v61  ;;  %v1060_v2 = vpack.c.bf16 %v85_v1, %v84_v0  ;;  %v258_v3 = vld [vmem:[#allocation7 + $0x100] sm:$0xff]  ;;  %v259_v4 = vld [vmem:[#allocation7 + $0x108] sm:$0xff]  ;;  %v260_v6 = vld [vmem:[#allocation7 + $0x110] sm:$0xff] }
  0x47   :  { %1017 = vmatprep.subr.bf16.mxu0 %v1016_v17  ;;  %v1064_v5 = vpack.c.bf16 %v259_v4, %v258_v3  ;;  %v261_v7 = vld [vmem:[#allocation7 + $0x118] sm:$0xff]  ;;  %v69_v8 = vld [vmem:[#allocation2 + $0x8] sm:$0xff]  ;;  %v262_v12 = vld [vmem:[#allocation7 + $0x120] sm:$0xff] }
  0x48   :  { %v1068_v9 = vpack.c.bf16 %v261_v7, %v260_v6  ;;  %v255_v11 = vld [vmem:[#allocation2 + $0x2] sm:$0xff]  ;;  %v264_v16 = vld [vmem:[#allocation7 + $0x130] sm:$0xff]  ;;  %v269_v23 = vld [vmem:[#allocation7 + $0x158] sm:$0xff] }
  0x49   :  { %1107 = vmatpush3.bf16.msra.mxu1 %v1104_v34  ;;  %v263_v14 = vld [vmem:[#allocation7 + $0x128] sm:$0xff]  ;;  %v266_v19 = vld [vmem:[#allocation7 + $0x140] sm:$0xff]  ;;  %v268_v22 = vld [vmem:[#allocation7 + $0x150] sm:$0xff] }
  0x4a   :  { %1019 = vmatpush3.bf16.msra.mxu0 %v1016_v17  ;;  %1109 = vmatprep.subr.bf16.mxu1 %v1108_v40  ;;  %v1072_v15 = vpack.c.bf16 %v263_v14, %v262_v12  ;;  %v265_v17 = vld [vmem:[#allocation7 + $0x138] sm:$0xff]  ;;  %v1084_v24 = vpack.c.bf16 %v269_v23, %v268_v22  ;;  %v270_v25 = vld [vmem:[#allocation7 + $0x160] sm:$0xff]  ;;  %v271_v26 = vld [vmem:[#allocation7 + $0x168] sm:$0xff] }
  0x4b   :  { %1021 = vmatprep.subr.bf16.mxu0 %v1020_v20  ;;  %v1076_v18 = vpack.c.bf16 %v265_v17, %v264_v16  ;;  %v1088_v27 = vpack.c.bf16 %v271_v26, %v270_v25  ;;  %v272_v28 = vld [vmem:[#allocation7 + $0x170] sm:$0xff]  ;;  %v273_v29 = vld [vmem:[#allocation7 + $0x178] sm:$0xff]  ;;  %v399_v35 = vld [vmem:[#allocation9 + $0xe0] sm:$0xff] }
  0x4c   :  { %v1092_v30 = vpack.c.bf16 %v273_v29, %v272_v28  ;;  %v397_v32 = vld [vmem:[#allocation9 + $0xd0] sm:$0xff]  ;;  %v398_v33 = vld [vmem:[#allocation9 + $0xd8] sm:$0xff]  ;;  %v400_v36 = vld [vmem:[#allocation9 + $0xe8] sm:$0xff] }
  0x4d   :  { %1111 = vmatpush3.bf16.msra.mxu1 %v1108_v40  ;;  %v1116_v34 = vpack.c.bf16 %v398_v33, %v397_v32  ;;  %v401_v38 = vld [vmem:[#allocation9 + $0xf0] sm:$0xff]  ;;  %v402_v39 = vld [vmem:[#allocation9 + $0xf8] sm:$0xff]  ;;  %v368_v41 = vld [vmem:[#allocation9] sm:$0xff] }
  0x4e   :  { %1023 = vmatpush3.bf16.msra.mxu0 %v1020_v20  ;;  %1113 = vmatprep.subr.bf16.mxu1 %v1112_v46  ;;  %v267_v20 = vld [vmem:[#allocation7 + $0x148] sm:$0xff]  ;;  %v1124_v40 = vpack.c.bf16 %v402_v39, %v401_v38  ;;  %v680_v44 = vld [vmem:[%s1423_s2] ss:$0 sm:$0xff]  ;;  %v370_v49 = vld [vmem:[#allocation9 + $0x10] sm:$0xff] }
  0x4f   :  { %1025 = vmatprep.subr.bf16.mxu0 %v1024_v31  ;;  %v1080_v21 = vpack.c.bf16 %v267_v20, %v266_v19  ;;  %v369_v42 = vld [vmem:[#allocation9 + $0x8] sm:$0xff]  ;;  %v371_v50 = vld [vmem:[#allocation9 + $0x18] sm:$0xff]  ;;  %v376_v61 = vld [vmem:[#allocation9 + $0x40] sm:$0xff] }
  0x50   :  { %v1132_v53 = vpack.c.bf16 %v371_v50, %v370_v49  ;;  %v373_v55 = vld [vmem:[#allocation9 + $0x28] sm:$0xff]  ;;  %v375_v58 = vld [vmem:[#allocation9 + $0x38] sm:$0xff]  ;;  %v378_v0 = vld [vmem:[#allocation9 + $0x50] sm:$0xff] }
  0x51   :  { %1115 = vmatpush3.bf16.msra.mxu1 %v1112_v46  ;;  %v377_v62 = vld [vmem:[#allocation9 + $0x48] sm:$0xff]  ;;  %v379_v1 = vld [vmem:[#allocation9 + $0x58] sm:$0xff]  ;;  %v380_v3 = vld [vmem:[#allocation9 + $0x60] sm:$0xff] }
  0x52   :  { %1027 = vmatpush3.bf16.msra.mxu0 %v1024_v31  ;;  %v256_v31 = vld [vmem:[#allocation2 + $0xa] sm:$0xff]  ;;  %1117 = vmatprep.subr.bf16.mxu1 %v1116_v34  ;;  %v383_v7 = vld [vmem:[#allocation9 + $0x78] sm:$0xff]  ;;  %v564_v25 = vld [vmem:[#allocation9 + $0x140] sm:$0xff] }
  0x53   :  { %1029 = vmatprep.subr.bf16.mxu0 %v1028_v37  ;;  %v381_v4 = vld [vmem:[#allocation9 + $0x68] sm:$0xff]  ;;  %v382_v6 = vld [vmem:[#allocation9 + $0x70] sm:$0xff]  ;;  %v563_v23 = vld [vmem:[#allocation9 + $0x138] sm:$0xff] }
  0x54   :  { %v558_v14 = vld [vmem:[#allocation9 + $0x110] sm:$0xff]  ;;  %v561_v19 = vld [vmem:[#allocation9 + $0x128] sm:$0xff]  ;;  %v567_v29 = vld [vmem:[#allocation9 + $0x158] sm:$0xff] }
  0x55   :  { %1119 = vmatpush3.bf16.msra.mxu1 %v1116_v34  ;;  %v562_v22 = vld [vmem:[#allocation9 + $0x130] sm:$0xff]  ;;  %v565_v26 = vld [vmem:[#allocation9 + $0x148] sm:$0xff]  ;;  %v681_v38 = vld [vmem:[%s1425_s4] ss:$0 sm:$0xff] }
  0x56   :  { %1031 = vmatpush3.bf16.msra.mxu0 %v1028_v37  ;;  %v1120_v37 = vpack.c.bf16 %v400_v36, %v399_v35  ;;  %v566_v28 = vld [vmem:[#allocation9 + $0x150] sm:$0xff]  ;;  %v569_v32 = vld [vmem:[#allocation9 + $0x168] sm:$0xff]  ;;  %v571_v35 = vld [vmem:[#allocation9 + $0x178] sm:$0xff] }
  0x57   :  { %1033 = vmatprep.subr.bf16.mxu0 %v1032_v43  ;;  %v570_v34 = vld [vmem:[#allocation9 + $0x170] sm:$0xff] }
  0x58   :  { %1121 = vmatprep.subr.bf16.mxu1 %v1120_v37  ;;  %v1188_v36 = vpack.c.bf16 %v571_v35, %v570_v34 }
  0x59   :  { %823 = vmatmul.mubr.f32.vlgmr.msra.gmra.mrb[0].mxu0 %v1394_v13  ;;  %1123 = vmatpush3.bf16.msra.mxu1 %v1120_v37 }
  0x5a   :  { %1035 = vmatpush3.bf16.msra.mxu0 %v1032_v43  ;;  %857 = vmatprep.mubr.f32.mxu0 %v68_v48  ;;  %v1128_v43 = vpack.c.bf16 %v369_v42, %v368_v41 }
  0x5b   :  { %1037 = vmatprep.subr.bf16.mxu0 %v1036_v47  ;;  %1125 = vmatprep.subr.bf16.mxu1 %v1124_v40 }
  0x5d   :  { %1127 = vmatpush3.bf16.msra.mxu1 %v1124_v40 }
  0x5e   :  { %1039 = vmatpush3.bf16.msra.mxu0 %v1036_v47  ;;  %1129 = vmatprep.subr.bf16.mxu1 %v1128_v43 }
  0x5f   :  { %1041 = vmatprep.subr.bf16.mxu0 %v1040_v51 }
  0x62   :  { %1043 = vmatpush3.bf16.msra.mxu0 %v1040_v51 }
  0x63   :  { %1045 = vmatprep.subr.bf16.mxu0 %v1044_v54 }
  0x66   :  { %1047 = vmatpush3.bf16.msra.mxu0 %v1044_v54  ;;  %v372_v54 = vld [vmem:[#allocation9 + $0x20] sm:$0xff] }
  0x67   :  { %1049 = vmatprep.subr.bf16.mxu0 %v1048_v57  ;;  %v1136_v56 = vpack.c.bf16 %v373_v55, %v372_v54 }
  0x6a   :  { %1051 = vmatpush3.bf16.msra.mxu0 %v1048_v57  ;;  %v374_v57 = vld [vmem:[#allocation9 + $0x30] sm:$0xff] }
  0x6b   :  { %1053 = vmatprep.subr.bf16.mxu0 %v1052_v60 }
  0x6e   :  { %1055 = vmatpush3.bf16.msra.mxu0 %v1052_v60  ;;  %v1140_v60 = vpack.c.bf16 %v375_v58, %v374_v57 }
  0x6f   :  { %1057 = vmatprep.subr.bf16.mxu0 %v1056_v63 }
  0x72   :  { %1059 = vmatpush3.bf16.msra.mxu0 %v1056_v63  ;;  %v1144_v63 = vpack.c.bf16 %v377_v62, %v376_v61 }
  0x73   :  { %1061 = vmatprep.subr.bf16.mxu0 %v1060_v2 }
  0x76   :  { %1063 = vmatpush3.bf16.msra.mxu0 %v1060_v2  ;;  %v1148_v2 = vpack.c.bf16 %v379_v1, %v378_v0 }
  0x77   :  { %1065 = vmatprep.subr.bf16.mxu0 %v1064_v5 }
  0x79   :  { %858 = vmatmul.mubr.f32.vlgmr.msra.gmra.mrb[0].mxu0 %v69_v8  ;;  %v1156_v8 = vpack.c.bf16 %v383_v7, %v382_v6 }
  0x7a   :  { %1067 = vmatpush3.bf16.msra.mxu0 %v1064_v5  ;;  %892 = vmatprep.mubr.f32.mxu0 %v255_v11  ;;  %v1152_v5 = vpack.c.bf16 %v381_v4, %v380_v3  ;;  %v557_v11 = vld [vmem:[#allocation9 + $0x108] sm:$0xff] }
  0x7b   :  { %1069 = vmatprep.subr.bf16.mxu0 %v1068_v9 }
  0x7e   :  { %1071 = vmatpush3.bf16.msra.mxu0 %v1068_v9  ;;  %v556_v9 = vld [vmem:[#allocation9 + $0x100] sm:$0xff] }
  0x7f   :  { %1073 = vmatprep.subr.bf16.mxu0 %v1072_v15  ;;  %v1160_v12 = vpack.c.bf16 %v557_v11, %v556_v9 }
  0x82   :  { %1075 = vmatpush3.bf16.msra.mxu0 %v1072_v15  ;;  %v559_v15 = vld [vmem:[#allocation9 + $0x118] sm:$0xff] }
  0x83   :  { %1077 = vmatprep.subr.bf16.mxu0 %v1076_v18  ;;  %v1164_v16 = vpack.c.bf16 %v559_v15, %v558_v14 }
  0x86   :  { %1079 = vmatpush3.bf16.msra.mxu0 %v1076_v18  ;;  %v560_v18 = vld [vmem:[#allocation9 + $0x120] sm:$0xff] }
  0x87   :  { %1081 = vmatprep.subr.bf16.mxu0 %v1080_v21 }
  0x8a   :  { %1083 = vmatpush3.bf16.msra.mxu0 %v1080_v21  ;;  %v1168_v21 = vpack.c.bf16 %v561_v19, %v560_v18 }
  0x8b   :  { %1085 = vmatprep.subr.bf16.mxu0 %v1084_v24 }
  0x8e   :  { %1087 = vmatpush3.bf16.msra.mxu0 %v1084_v24  ;;  %v1172_v24 = vpack.c.bf16 %v563_v23, %v562_v22 }
  0x8f   :  { %1089 = vmatprep.subr.bf16.mxu0 %v1088_v27 }
  0x92   :  { %1091 = vmatpush3.bf16.msra.mxu0 %v1088_v27  ;;  %v1176_v27 = vpack.c.bf16 %v565_v26, %v564_v25 }
  0x93   :  { %1093 = vmatprep.subr.bf16.mxu0 %v1092_v30 }
  0x96   :  { %1095 = vmatpush3.bf16.msra.mxu0 %v1092_v30  ;;  %v1180_v30 = vpack.c.bf16 %v567_v29, %v566_v28 }
  0x99   :  { %893 = vmatmul.mubr.f32.vlgmr.msra.gmra.mrb[0].mxu0 %v256_v31  ;;  %v568_v31 = vld [vmem:[#allocation9 + $0x160] sm:$0xff] }
  0x9a   :  { %v1184_v33 = vpack.c.bf16 %v569_v32, %v568_v31 }
 0x16c   :  { %v894_v45 = vpop.f32.mrb[0].mxu0 }
 0x16d   :  { %v359_v46 = vadd.f32 %v894_v45, %v680_v44  ;;  %v340_v47 = vpop.f32.mrb[1].mxu0 }
 0x16e   :  { %v358_v48 = vadd.f32 %v680_v44, %v340_v47 }
 0x16f   :  { %v361_v51 = vmax.f32 %v359_v46, 0.0 }
 0x170   :  { %v360_v52 = vmax.f32 %v358_v48, 0.0 }
 0x171   :  { %365 = vst [vmem:[#allocation3 + $0x9] sm:$0xff] %v361_v51 }
 0x172   :  { %364 = vst [vmem:[#allocation3 + $0x1] sm:$0xff] %v360_v52  ;;  %927 = vmatprep.mubr.f32.mxu1 %v360_v52 }
 0x173   :  { %928 = vmatmul.mubr.f32.vlgmr.msra.gmra.mrb[0].mxu1 %v361_v51 }
 0x174   :  { %1131 = vmatpush3.bf16.msra.mxu1 %v1128_v43 }
 0x175   :  { %1133 = vmatprep.subr.bf16.mxu1 %v1132_v53 }
 0x178   :  { %1135 = vmatpush3.bf16.msra.mxu1 %v1132_v53  ;;  %v554_v37 = vld [vmem:[#allocation3 + $0xa] sm:$0xff] }
 0x179   :  { %v366_v59 = vld [vmem:[#allocation3] sm:$0xff]  ;;  %1137 = vmatprep.subr.bf16.mxu1 %v1136_v56  ;;  %v367_v17 = vld [vmem:[#allocation3 + $0x8] sm:$0xff] }
 0x17a   :  { %962 = vmatprep.mubr.f32.mxu1 %v366_v59  ;;  %v553_v20 = vld [vmem:[#allocation3 + $0x2] sm:$0xff] }
 0x17c   :  { %1139 = vmatpush3.bf16.msra.mxu1 %v1136_v56 }
 0x17d   :  { %1141 = vmatprep.subr.bf16.mxu1 %v1140_v60 }
 0x180   :  { %1143 = vmatpush3.bf16.msra.mxu1 %v1140_v60 }
 0x181   :  { %1145 = vmatprep.subr.bf16.mxu1 %v1144_v63 }
 0x184   :  { %1147 = vmatpush3.bf16.msra.mxu1 %v1144_v63 }
 0x185   :  { %1149 = vmatprep.subr.bf16.mxu1 %v1148_v2 }
 0x188   :  { %1151 = vmatpush3.bf16.msra.mxu1 %v1148_v2 }
 0x189   :  { %1153 = vmatprep.subr.bf16.mxu1 %v1152_v5 }
 0x18c   :  { %1155 = vmatpush3.bf16.msra.mxu1 %v1152_v5 }
 0x18d   :  { %1157 = vmatprep.subr.bf16.mxu1 %v1156_v8 }
 0x190   :  { %1159 = vmatpush3.bf16.msra.mxu1 %v1156_v8 }
 0x191   :  { %1161 = vmatprep.subr.bf16.mxu1 %v1160_v12 }
 0x193   :  { %963 = vmatmul.mubr.f32.vlgmr.msra.gmra.mrb[0].mxu1 %v367_v17 }
 0x194   :  { %1163 = vmatpush3.bf16.msra.mxu1 %v1160_v12  ;;  %997 = vmatprep.mubr.f32.mxu1 %v553_v20 }
 0x195   :  { %1165 = vmatprep.subr.bf16.mxu1 %v1164_v16 }
 0x198   :  { %1167 = vmatpush3.bf16.msra.mxu1 %v1164_v16 }
 0x199   :  { %1169 = vmatprep.subr.bf16.mxu1 %v1168_v21 }
 0x19c   :  { %1171 = vmatpush3.bf16.msra.mxu1 %v1168_v21 }
 0x19d   :  { %1173 = vmatprep.subr.bf16.mxu1 %v1172_v24 }
 0x1a0   :  { %1175 = vmatpush3.bf16.msra.mxu1 %v1172_v24 }
 0x1a1   :  { %1177 = vmatprep.subr.bf16.mxu1 %v1176_v27 }
 0x1a4   :  { %1179 = vmatpush3.bf16.msra.mxu1 %v1176_v27 }
 0x1a5   :  { %1181 = vmatprep.subr.bf16.mxu1 %v1180_v30 }
 0x1a8   :  { %1183 = vmatpush3.bf16.msra.mxu1 %v1180_v30 }
 0x1a9   :  { %1185 = vmatprep.subr.bf16.mxu1 %v1184_v33 }
 0x1ac   :  { %1187 = vmatpush3.bf16.msra.mxu1 %v1184_v33 }
 0x1ad   :  { %1189 = vmatprep.subr.bf16.mxu1 %v1188_v36 }
 0x1b0   :  { %1191 = vmatpush3.bf16.msra.mxu1 %v1188_v36 }
 0x1b3   :  { %998 = vmatmul.mubr.f32.vlgmr.msra.gmra.mrb[0].mxu1 %v554_v37 }
 0x286   :  { %v999_v39 = vpop.f32.mrb[0].mxu1 }
 0x287   :  { %v657_v40 = vadd.f32 %v999_v39, %v681_v38  ;;  %v638_v41 = vpop.f32.mrb[1].mxu1 }
 0x288   :  { %v656_v42 = vadd.f32 %v681_v38, %v638_v41 }
 0x289   :  { %v659_v43 = vadd.f32 %v657_v40, %v1394_v13 }
 0x28a   :  { %v658_v44 = vadd.f32 %v656_v42, %v1390_v10 }
 0x28b   :  { %661 = vst [vmem:[#allocation10 + $0x8] sm:$0xff] %v659_v43 }
 0x28c   :  { %660 = vst [vmem:[#allocation10] sm:$0xff] %v658_v44 }
 0x28d   :  { %1284 = shalt.err (!%p1281_p0)
}
 0x28e   :  { %s1285_s12 = scalar_lea.hbm %s1426_s5, 256 }
 0x28f   :  { %p1286_p1 = scmp.ne.s32.totalorder %s1426_s5, %s1285_s12  ;;  %p1289_p2 = scmp.lt.u32.totalorder %s1285_s12, %s1426_s5 }
 0x291   :  { %p1291_p3 = pnand %p1289_p2, %p1286_p1 }
 0x293   :  { %1294 = shalt.err (!%p1291_p3)
}
 0x294   :  { %673 = dma.vmem_to_hbm [thread:$0]  %s668_s9, 256, %s1426_s5, [#allocation6], %s1303_s30, %s1303_s30, %s1304_s6  }
 0x295   :  { %1299 = dma.done.wait [#allocation6], 256  }
 0x296   :  { %1300 = vsyncadd [#allocation6], 4294967040 }
 0x297   :  { %677 = vsyncpa [#allocation5], 1 }
 0x298   :  { %678 = vsyncpa [#allocation8], 1 }
 0x299   :  { %679 = vsyncpa [#allocation6], 1 }

// kernel: tpu_custom_call.1
= control target key start
LH: loop header
LB: loop body
LE: loop exit
PB: predicated region body
PF: predicated region fallthrough
CT: control target
= control target key end

     0   :  { %10 = vsyncpa [#allocation5], 0  ;;  %s1421_s0 = inlined_call_operand.hbm [shape: f32[1,16,128], index: 0, kind: input, shape index: {}]   ;;  %s1422_s1 = inlined_call_operand.hbm [shape: f32[3,128,128], index: 1, kind: input, shape index: {}]   ;;  %s1423_s2 = inlined_call_operand.vmem [shape: f32[1,128], index: 2, kind: input, shape index: {}]   ;;  %s1424_s3 = inlined_call_operand.hbm [shape: f32[3,128,128], index: 3, kind: input, shape index: {}]   ;;  %s1425_s4 = inlined_call_operand.vmem [shape: f32[1,128], index: 4, kind: input, shape index: {}]   ;;  %s1426_s5 = inlined_call_operand.hbm [shape: f32[1,16,128], index: 5, kind: output, shape index: {}]  }
   0x1   :  { %11 = vsyncpa [#allocation8], 0 }
   0x2   :  { %12 = vsyncpa [#allocation6], 0  ;;  %s1301_s18 = smov [#allocation7]   ;;  %s1302_s20 = smov [#allocation4]  }
   0x3   :  { %s30_s19 = sshll.u32 %s1301_s18, 4  ;;  %s18_s21 = sshll.u32 %s1302_s20, 4  ;;  %s31_s19 = int_to_ptr.vmem [resolvable:$true] %s30_s19  ;;  %s1338_s21 = int_to_ptr.vmem [resolvable:$true] %s18_s21 }
   0x4   :  { %s1207_s24 = scalar_lea.hbm %s1422_s1, 6144 }
   0x5   :  { %p1208_p0 = scmp.ne.s32.totalorder %s1422_s1, %s1207_s24  ;;  %p1211_p1 = scmp.lt.u32.totalorder %s1207_s24, %s1422_s1 }
   0x7   :  { %p1213_p2 = pnand %p1211_p1, %p1208_p0 }
   0x9   :  { %1216 = shalt.err (!%p1213_p2)
}
   0xa   :  { %s1217_s29 = scalar_lea.vmem %s31_s19, 6144  ;;  %p1222_p4 = scmp.lt.s32.totalorder %s31_s19, %s31_s19 }
   0xb   :  { %p1218_p3 = scmp.ne.s32.totalorder %s31_s19, %s1217_s29  ;;  %p1223_p5 = scmp.lt.s32.totalorder %s1217_s29, %s1217_s29 }
   0xd   :  { %p1224_p6 = por %p1223_p5, %p1222_p4 }
   0xf   :  { %p1225_p7 = pnand %p1224_p6, %p1218_p3 }
  0x11   :  { %1228 = shalt.err (!%p1225_p7)
}
  0x12   :  { %s1303_s30 = smov 128   ;;  %s1304_s6 = smov 8  }
  0x13   :  { %36 = dma.hbm_to_vmem [thread:$0]  %s1422_s1, 6144, %s31_s19, [#allocation8], %s1303_s30, %s1303_s30, %s1304_s6  }
  0x14   :  { %s1229_s11 = scalar_lea.hbm %s1421_s0, 256 }
  0x15   :  { %p1230_p8 = scmp.ne.s32.totalorder %s1421_s0, %s1229_s11  ;;  %p1233_p9 = scmp.lt.u32.totalorder %s1229_s11, %s1421_s0 }
  0x17   :  { %p1235_p10 = pnand %p1233_p9, %p1230_p8 }
  0x19   :  { %1238 = shalt.err (!%p1235_p10)
}
  0x1a   :  { %s1239_s16 = scalar_lea.vmem %s1338_s21, 256  ;;  %p1244_p12 = scmp.lt.s32.totalorder %s1338_s21, %s1338_s21 }
  0x1b   :  { %p1240_p11 = scmp.ne.s32.totalorder %s1338_s21, %s1239_s16  ;;  %p1245_p13 = scmp.lt.s32.totalorder %s1239_s16, %s1239_s16 }
  0x1d   :  { %p1246_p0 = por %p1245_p13, %p1244_p12 }
  0x1f   :  { %p1247_p1 = pnand %p1246_p0, %p1240_p11 }
  0x21   :  { %1250 = shalt.err (!%p1247_p1)
}
  0x22   :  { %24 = dma.hbm_to_vmem [thread:$0]  %s1421_s0, 256, %s1338_s21, [#allocation5], %s1303_s30, %s1303_s30, %s1304_s6  }
  0x23   :  { %s1305_s18 = smov [#allocation9]   ;;  %s1251_s23 = scalar_lea.hbm %s1424_s3, 6144 }
  0x24   :  { %s44_s19 = sshll.u32 %s1305_s18, 4  ;;  %p1252_p2 = scmp.ne.s32.totalorder %s1424_s3, %s1251_s23  ;;  %s45_s19 = int_to_ptr.vmem [resolvable:$true] %s44_s19 }
  0x25   :  { %p1255_p3 = scmp.lt.u32.totalorder %s1251_s23, %s1424_s3 }
  0x27   :  { %p1257_p4 = pnand %p1255_p3, %p1252_p2 }
  0x29   :  { %1260 = shalt.err (!%p1257_p4)
}
  0x2a   :  { %s1261_s28 = scalar_lea.vmem %s45_s19, 6144  ;;  %p1266_p6 = scmp.lt.s32.totalorder %s45_s19, %s45_s19 }
  0x2b   :  { %p1262_p5 = scmp.ne.s32.totalorder %s45_s19, %s1261_s28  ;;  %p1267_p7 = scmp.lt.s32.totalorder %s1261_s28, %s1261_s28 }
  0x2d   :  { %p1268_p8 = por %p1267_p7, %p1266_p6 }
  0x2f   :  { %p1269_p9 = pnand %p1268_p8, %p1262_p5 }
  0x31   :  { %1272 = shalt.err (!%p1269_p9)
}
  0x32   :  { %50 = dma.hbm_to_vmem [thread:$0]  %s1424_s3, 6144, %s45_s19, [#allocation8], %s1303_s30, %s1303_s30, %s1304_s6  }
  0x33   :  { %1295 = dma.done.wait [#allocation5], 256  }
  0x34   :  { %1296 = vsyncadd [#allocation5], 4294967040 }
  0x35   :  { %1297 = dma.done.wait [#allocation8], 12288  }
  0x36   :  { %1298 = vsyncadd [#allocation8], 4294955008  ;;  %v1306_v0 = vmov 0.0   ;;  %v89_v1 = vld [vmem:[#allocation7 + $0x80] sm:$0xff]  ;;  %v90_v2 = vld [vmem:[#allocation7 + $0x88] sm:$0xff]  ;;  %s1307_s8 = smov [#allocation10]  }
  0x37   :  { %64 = vst [vmem:[#allocation2] sm:$0x1] %v1306_v0  ;;  %65 = vst [vmem:[#allocation2 + $0x11] sm:$0x1] %v1306_v0  ;;  %v91_v3 = vld [vmem:[#allocation7 + $0x90] sm:$0xff]  ;;  %v1000_v4 = vpack.c.bf16 %v90_v2, %v89_v1  ;;  %v92_v5 = vld [vmem:[#allocation7 + $0x98] sm:$0xff] }
  0x38   :  { %362 = vst [vmem:[#allocation3] sm:$0x1] %v1306_v0  ;;  %363 = vst [vmem:[#allocation3 + $0x11] sm:$0x1] %v1306_v0  ;;  %v1004_v6 = vpack.c.bf16 %v92_v5, %v91_v3  ;;  %v93_v7 = vld [vmem:[#allocation7 + $0xa0] sm:$0xff]  ;;  %v94_v8 = vld [vmem:[#allocation7 + $0xa8] sm:$0xff] }
  0x39   :  { %1001 = vmatprep.subr.bf16.mxu0 %v1000_v4  ;;  %v1008_v9 = vpack.c.bf16 %v94_v8, %v93_v7  ;;  %v1390_v10 = vld [vmem:[#allocation4] sm:$0xff]  ;;  %v96_v12 = vld [vmem:[#allocation7 + $0xb8] sm:$0xff]  ;;  %v97_v15 = vld [vmem:[#allocation7 + $0xc0] sm:$0xff]  ;;  %s667_s9 = sshll.u32 %s1307_s8, 4  ;;  %s668_s9 = int_to_ptr.vmem [resolvable:$true] %s667_s9 }
  0x3a   :  { %1003 = vmatpush3.bf16.msra.mxu0 %v1000_v4  ;;  %v95_v11 = vld [vmem:[#allocation7 + $0xb0] sm:$0xff]  ;;  %66 = vst [vmem:[#allocation2 + $0x1] sm:$0xff] %v1390_v10  ;;  %822 = vmatprep.mubr.f32.mxu0 %v1390_v10  ;;  %v1394_v13 = vld [vmem:[#allocation4 + $0x8] sm:$0xff]  ;;  %v98_v16 = vld [vmem:[#allocation7 + $0xc8] sm:$0xff]  ;;  %s1273_s10 = scalar_lea.vmem %s668_s9, 256  ;;  %p1278_p11 = scmp.lt.s32.totalorder %s668_s9, %s668_s9 }
  0x3b   :  { %1005 = vmatprep.subr.bf16.mxu0 %v1004_v6  ;;  %67 = vst [vmem:[#allocation2 + $0x9] sm:$0xff] %v1394_v13  ;;  %v1012_v14 = vpack.c.bf16 %v96_v12, %v95_v11  ;;  %v1016_v17 = vpack.c.bf16 %v98_v16, %v97_v15  ;;  %v99_v18 = vld [vmem:[#allocation7 + $0xd0] sm:$0xff]  ;;  %v100_v19 = vld [vmem:[#allocation7 + $0xd8] sm:$0xff]  ;;  %v101_v21 = vld [vmem:[#allocation7 + $0xe0] sm:$0xff]  ;;  %p1274_p10 = scmp.ne.s32.totalorder %s668_s9, %s1273_s10  ;;  %p1279_p12 = scmp.lt.s32.totalorder %s1273_s10, %s1273_s10 }
  0x3c   :  { %v1020_v20 = vpack.c.bf16 %v100_v19, %v99_v18  ;;  %v102_v22 = vld [vmem:[#allocation7 + $0xe8] sm:$0xff]  ;;  %v387_v23 = vld [vmem:[#allocation9 + $0x80] sm:$0xff]  ;;  %v389_v25 = vld [vmem:[#allocation9 + $0x90] sm:$0xff] }
  0x3d   :  { %v388_v24 = vld [vmem:[#allocation9 + $0x88] sm:$0xff]  ;;  %v390_v27 = vld [vmem:[#allocation9 + $0x98] sm:$0xff]  ;;  %v391_v29 = vld [vmem:[#allocation9 + $0xa0] sm:$0xff]  ;;  %v1024_v31 = vpack.c.bf16 %v102_v22, %v101_v21  ;;  %p1280_p13 = por %p1279_p12, %p1278_p11 }
  0x3e   :  { %1007 = vmatpush3.bf16.msra.mxu0 %v1004_v6  ;;  %v1096_v26 = vpack.c.bf16 %v388_v24, %v387_v23  ;;  %v1100_v28 = vpack.c.bf16 %v390_v27, %v389_v25  ;;  %v392_v30 = vld [vmem:[#allocation9 + $0xa8] sm:$0xff]  ;;  %v103_v32 = vld [vmem:[#allocation7 + $0xf0] sm:$0xff]  ;;  %v104_v33 = vld [vmem:[#allocation7 + $0xf8] sm:$0xff] }
  0x3f   :  { %1009 = vmatprep.subr.bf16.mxu0 %v1008_v9  ;;  %v1104_v34 = vpack.c.bf16 %v392_v30, %v391_v29  ;;  %v393_v35 = vld [vmem:[#allocation9 + $0xb0] sm:$0xff]  ;;  %v394_v36 = vld [vmem:[#allocation9 + $0xb8] sm:$0xff]  ;;  %v1028_v37 = vpack.c.bf16 %v104_v33, %v103_v32  ;;  %v70_v38 = vld [vmem:[#allocation7] sm:$0xff]  ;;  %p1281_p0 = pnand %p1280_p13, %p1274_p10 }
  0x40   :  { %1097 = vmatprep.subr.bf16.mxu1 %v1096_v26  ;;  %v71_v39 = vld [vmem:[#allocation7 + $0x8] sm:$0xff]  ;;  %v1108_v40 = vpack.c.bf16 %v394_v36, %v393_v35  ;;  %v395_v41 = vld [vmem:[#allocation9 + $0xc0] sm:$0xff]  ;;  %v72_v44 = vld [vmem:[#allocation7 + $0x10] sm:$0xff] }
  0x41   :  { %1099 = vmatpush3.bf16.msra.mxu1 %v1096_v26  ;;  %v396_v42 = vld [vmem:[#allocation9 + $0xc8] sm:$0xff]  ;;  %v1032_v43 = vpack.c.bf16 %v71_v39, %v70_v38  ;;  %v73_v45 = vld [vmem:[#allocation7 + $0x18] sm:$0xff]  ;;  %v68_v48 = vld [vmem:[#allocation2] sm:$0xff] }
  0x42   :  { %1011 = vmatpush3.bf16.msra.mxu0 %v1008_v9  ;;  %1101 = vmatprep.subr.bf16.mxu1 %v1100_v28  ;;  %v1112_v46 = vpack.c.bf16 %v396_v42, %v395_v41  ;;  %v1036_v47 = vpack.c.bf16 %v73_v45, %v72_v44  ;;  %v74_v49 = vld [vmem:[#allocation7 + $0x20] sm:$0xff]  ;;  %v75_v50 = vld [vmem:[#allocation7 + $0x28] sm:$0xff]  ;;  %v76_v52 = vld [vmem:[#allocation7 + $0x30] sm:$0xff] }
  0x43   :  { %1013 = vmatprep.subr.bf16.mxu0 %v1012_v14  ;;  %v1040_v51 = vpack.c.bf16 %v75_v50, %v74_v49  ;;  %v77_v53 = vld [vmem:[#allocation7 + $0x38] sm:$0xff]  ;;  %v78_v55 = vld [vmem:[#allocation7 + $0x40] sm:$0xff]  ;;  %v79_v56 = vld [vmem:[#allocation7 + $0x48] sm:$0xff] }
  0x44   :  { %v1044_v54 = vpack.c.bf16 %v77_v53, %v76_v52  ;;  %v1048_v57 = vpack.c.bf16 %v79_v56, %v78_v55  ;;  %v80_v58 = vld [vmem:[#allocation7 + $0x50] sm:$0xff]  ;;  %v81_v59 = vld [vmem:[#allocation7 + $0x58] sm:$0xff]  ;;  %v82_v61 = vld [vmem:[#allocation7 + $0x60] sm:$0xff] }
  0x45   :  { %1103 = vmatpush3.bf16.msra.mxu1 %v1100_v28  ;;  %v1052_v60 = vpack.c.bf16 %v81_v59, %v80_v58  ;;  %v83_v62 = vld [vmem:[#allocation7 + $0x68] sm:$0xff]  ;;  %v84_v0 = vld [vmem:[#allocation7 + $0x70] sm:$0xff]  ;;  %v85_v1 = vld [vmem:[#allocation7 + $0x78] sm:$0xff] }
  0x46   :  { %1015 = vmatpush3.bf16.msra.mxu0 %v1012_v14  ;;  %1105 = vmatprep.subr.bf16.mxu1 %v1104_v34  ;;  %v1056_v63 = vpack.c.bf16 %v83_v62, %v82_v61  ;;  %v1060_v2 = vpack.c.bf16 %v85_v1, %v84_v0  ;;  %v258_v3 = vld [vmem:[#allocation7 + $0x100] sm:$0xff]  ;;  %v259_v4 = vld [vmem:[#allocation7 + $0x108] sm:$0xff]  ;;  %v260_v6 = vld [vmem:[#allocation7 + $0x110] sm:$0xff] }
  0x47   :  { %1017 = vmatprep.subr.bf16.mxu0 %v1016_v17  ;;  %v1064_v5 = vpack.c.bf16 %v259_v4, %v258_v3  ;;  %v261_v7 = vld [vmem:[#allocation7 + $0x118] sm:$0xff]  ;;  %v69_v8 = vld [vmem:[#allocation2 + $0x8] sm:$0xff]  ;;  %v262_v12 = vld [vmem:[#allocation7 + $0x120] sm:$0xff] }
  0x48   :  { %v1068_v9 = vpack.c.bf16 %v261_v7, %v260_v6  ;;  %v255_v11 = vld [vmem:[#allocation2 + $0x2] sm:$0xff]  ;;  %v264_v16 = vld [vmem:[#allocation7 + $0x130] sm:$0xff]  ;;  %v269_v23 = vld [vmem:[#allocation7 + $0x158] sm:$0xff] }
  0x49   :  { %1107 = vmatpush3.bf16.msra.mxu1 %v1104_v34  ;;  %v263_v14 = vld [vmem:[#allocation7 + $0x128] sm:$0xff]  ;;  %v266_v19 = vld [vmem:[#allocation7 + $0x140] sm:$0xff]  ;;  %v268_v22 = vld [vmem:[#allocation7 + $0x150] sm:$0xff] }
  0x4a   :  { %1019 = vmatpush3.bf16.msra.mxu0 %v1016_v17  ;;  %1109 = vmatprep.subr.bf16.mxu1 %v1108_v40  ;;  %v1072_v15 = vpack.c.bf16 %v263_v14, %v262_v12  ;;  %v265_v17 = vld [vmem:[#allocation7 + $0x138] sm:$0xff]  ;;  %v1084_v24 = vpack.c.bf16 %v269_v23, %v268_v22  ;;  %v270_v25 = vld [vmem:[#allocation7 + $0x160] sm:$0xff]  ;;  %v271_v26 = vld [vmem:[#allocation7 + $0x168] sm:$0xff] }
  0x4b   :  { %1021 = vmatprep.subr.bf16.mxu0 %v1020_v20  ;;  %v1076_v18 = vpack.c.bf16 %v265_v17, %v264_v16  ;;  %v1088_v27 = vpack.c.bf16 %v271_v26, %v270_v25  ;;  %v272_v28 = vld [vmem:[#allocation7 + $0x170] sm:$0xff]  ;;  %v273_v29 = vld [vmem:[#allocation7 + $0x178] sm:$0xff]  ;;  %v399_v35 = vld [vmem:[#allocation9 + $0xe0] sm:$0xff] }
  0x4c   :  { %v1092_v30 = vpack.c.bf16 %v273_v29, %v272_v28  ;;  %v397_v32 = vld [vmem:[#allocation9 + $0xd0] sm:$0xff]  ;;  %v398_v33 = vld [vmem:[#allocation9 + $0xd8] sm:$0xff]  ;;  %v400_v36 = vld [vmem:[#allocation9 + $0xe8] sm:$0xff] }
  0x4d   :  { %1111 = vmatpush3.bf16.msra.mxu1 %v1108_v40  ;;  %v1116_v34 = vpack.c.bf16 %v398_v33, %v397_v32  ;;  %v401_v38 = vld [vmem:[#allocation9 + $0xf0] sm:$0xff]  ;;  %v402_v39 = vld [vmem:[#allocation9 + $0xf8] sm:$0xff]  ;;  %v368_v41 = vld [vmem:[#allocation9] sm:$0xff] }
  0x4e   :  { %1023 = vmatpush3.bf16.msra.mxu0 %v1020_v20  ;;  %1113 = vmatprep.subr.bf16.mxu1 %v1112_v46  ;;  %v267_v20 = vld [vmem:[#allocation7 + $0x148] sm:$0xff]  ;;  %v1124_v40 = vpack.c.bf16 %v402_v39, %v401_v38  ;;  %v680_v44 = vld [vmem:[%s1423_s2] ss:$0 sm:$0xff]  ;;  %v370_v49 = vld [vmem:[#allocation9 + $0x10] sm:$0xff] }
  0x4f   :  { %1025 = vmatprep.subr.bf16.mxu0 %v1024_v31  ;;  %v1080_v21 = vpack.c.bf16 %v267_v20, %v266_v19  ;;  %v369_v42 = vld [vmem:[#allocation9 + $0x8] sm:$0xff]  ;;  %v371_v50 = vld [vmem:[#allocation9 + $0x18] sm:$0xff]  ;;  %v376_v61 = vld [vmem:[#allocation9 + $0x40] sm:$0xff] }
  0x50   :  { %v1132_v53 = vpack.c.bf16 %v371_v50, %v370_v49  ;;  %v373_v55 = vld [vmem:[#allocation9 + $0x28] sm:$0xff]  ;;  %v375_v58 = vld [vmem:[#allocation9 + $0x38] sm:$0xff]  ;;  %v378_v0 = vld [vmem:[#allocation9 + $0x50] sm:$0xff] }
  0x51   :  { %1115 = vmatpush3.bf16.msra.mxu1 %v1112_v46  ;;  %v377_v62 = vld [vmem:[#allocation9 + $0x48] sm:$0xff]  ;;  %v379_v1 = vld [vmem:[#allocation9 + $0x58] sm:$0xff]  ;;  %v380_v3 = vld [vmem:[#allocation9 + $0x60] sm:$0xff] }
  0x52   :  { %1027 = vmatpush3.bf16.msra.mxu0 %v1024_v31  ;;  %v256_v31 = vld [vmem:[#allocation2 + $0xa] sm:$0xff]  ;;  %1117 = vmatprep.subr.bf16.mxu1 %v1116_v34  ;;  %v383_v7 = vld [vmem:[#allocation9 + $0x78] sm:$0xff]  ;;  %v564_v25 = vld [vmem:[#allocation9 + $0x140] sm:$0xff] }
  0x53   :  { %1029 = vmatprep.subr.bf16.mxu0 %v1028_v37  ;;  %v381_v4 = vld [vmem:[#allocation9 + $0x68] sm:$0xff]  ;;  %v382_v6 = vld [vmem:[#allocation9 + $0x70] sm:$0xff]  ;;  %v563_v23 = vld [vmem:[#allocation9 + $0x138] sm:$0xff] }
  0x54   :  { %v558_v14 = vld [vmem:[#allocation9 + $0x110] sm:$0xff]  ;;  %v561_v19 = vld [vmem:[#allocation9 + $0x128] sm:$0xff]  ;;  %v567_v29 = vld [vmem:[#allocation9 + $0x158] sm:$0xff] }
  0x55   :  { %1119 = vmatpush3.bf16.msra.mxu1 %v1116_v34  ;;  %v562_v22 = vld [vmem:[#allocation9 + $0x130] sm:$0xff]  ;;  %v565_v26 = vld [vmem:[#allocation9 + $0x148] sm:$0xff]  ;;  %v681_v38 = vld [vmem:[%s1425_s4] ss:$0 sm:$0xff] }
  0x56   :  { %1031 = vmatpush3.bf16.msra.mxu0 %v1028_v37  ;;  %v1120_v37 = vpack.c.bf16 %v400_v36, %v399_v35  ;;  %v566_v28 = vld [vmem:[#allocation9 + $0x150] sm:$0xff]  ;;  %v569_v32 = vld [vmem:[#allocation9 + $0x168] sm:$0xff]  ;;  %v571_v35 = vld [vmem:[#allocation9 + $0x178] sm:$0xff] }
  0x57   :  { %1033 = vmatprep.subr.bf16.mxu0 %v1032_v43  ;;  %v570_v34 = vld [vmem:[#allocation9 + $0x170] sm:$0xff] }
  0x58   :  { %1121 = vmatprep.subr.bf16.mxu1 %v1120_v37  ;;  %v1188_v36 = vpack.c.bf16 %v571_v35, %v570_v34 }
  0x59   :  { %823 = vmatmul.mubr.f32.vlgmr.msra.gmra.mrb[0].mxu0 %v1394_v13  ;;  %1123 = vmatpush3.bf16.msra.mxu1 %v1120_v37 }
  0x5a   :  { %1035 = vmatpush3.bf16.msra.mxu0 %v1032_v43  ;;  %857 = vmatprep.mubr.f32.mxu0 %v68_v48  ;;  %v1128_v43 = vpack.c.bf16 %v369_v42, %v368_v41 }
  0x5b   :  { %1037 = vmatprep.subr.bf16.mxu0 %v1036_v47  ;;  %1125 = vmatprep.subr.bf16.mxu1 %v1124_v40 }
  0x5d   :  { %1127 = vmatpush3.bf16.msra.mxu1 %v1124_v40 }
  0x5e   :  { %1039 = vmatpush3.bf16.msra.mxu0 %v1036_v47  ;;  %1129 = vmatprep.subr.bf16.mxu1 %v1128_v43 }
  0x5f   :  { %1041 = vmatprep.subr.bf16.mxu0 %v1040_v51 }
  0x62   :  { %1043 = vmatpush3.bf16.msra.mxu0 %v1040_v51 }
  0x63   :  { %1045 = vmatprep.subr.bf16.mxu0 %v1044_v54 }
  0x66   :  { %1047 = vmatpush3.bf16.msra.mxu0 %v1044_v54  ;;  %v372_v54 = vld [vmem:[#allocation9 + $0x20] sm:$0xff] }
  0x67   :  { %1049 = vmatprep.subr.bf16.mxu0 %v1048_v57  ;;  %v1136_v56 = vpack.c.bf16 %v373_v55, %v372_v54 }
  0x6a   :  { %1051 = vmatpush3.bf16.msra.mxu0 %v1048_v57  ;;  %v374_v57 = vld [vmem:[#allocation9 + $0x30] sm:$0xff] }
  0x6b   :  { %1053 = vmatprep.subr.bf16.mxu0 %v1052_v60 }
  0x6e   :  { %1055 = vmatpush3.bf16.msra.mxu0 %v1052_v60  ;;  %v1140_v60 = vpack.c.bf16 %v375_v58, %v374_v57 }
  0x6f   :  { %1057 = vmatprep.subr.bf16.mxu0 %v1056_v63 }
  0x72   :  { %1059 = vmatpush3.bf16.msra.mxu0 %v1056_v63  ;;  %v1144_v63 = vpack.c.bf16 %v377_v62, %v376_v61 }
  0x73   :  { %1061 = vmatprep.subr.bf16.mxu0 %v1060_v2 }
  0x76   :  { %1063 = vmatpush3.bf16.msra.mxu0 %v1060_v2  ;;  %v1148_v2 = vpack.c.bf16 %v379_v1, %v378_v0 }
  0x77   :  { %1065 = vmatprep.subr.bf16.mxu0 %v1064_v5 }
  0x79   :  { %858 = vmatmul.mubr.f32.vlgmr.msra.gmra.mrb[0].mxu0 %v69_v8  ;;  %v1156_v8 = vpack.c.bf16 %v383_v7, %v382_v6 }
  0x7a   :  { %1067 = vmatpush3.bf16.msra.mxu0 %v1064_v5  ;;  %892 = vmatprep.mubr.f32.mxu0 %v255_v11  ;;  %v1152_v5 = vpack.c.bf16 %v381_v4, %v380_v3  ;;  %v557_v11 = vld [vmem:[#allocation9 + $0x108] sm:$0xff] }
  0x7b   :  { %1069 = vmatprep.subr.bf16.mxu0 %v1068_v9 }
  0x7e   :  { %1071 = vmatpush3.bf16.msra.mxu0 %v1068_v9  ;;  %v556_v9 = vld [vmem:[#allocation9 + $0x100] sm:$0xff] }
  0x7f   :  { %1073 = vmatprep.subr.bf16.mxu0 %v1072_v15  ;;  %v1160_v12 = vpack.c.bf16 %v557_v11, %v556_v9 }
  0x82   :  { %1075 = vmatpush3.bf16.msra.mxu0 %v1072_v15  ;;  %v559_v15 = vld [vmem:[#allocation9 + $0x118] sm:$0xff] }
  0x83   :  { %1077 = vmatprep.subr.bf16.mxu0 %v1076_v18  ;;  %v1164_v16 = vpack.c.bf16 %v559_v15, %v558_v14 }
  0x86   :  { %1079 = vmatpush3.bf16.msra.mxu0 %v1076_v18  ;;  %v560_v18 = vld [vmem:[#allocation9 + $0x120] sm:$0xff] }
  0x87   :  { %1081 = vmatprep.subr.bf16.mxu0 %v1080_v21 }
  0x8a   :  { %1083 = vmatpush3.bf16.msra.mxu0 %v1080_v21  ;;  %v1168_v21 = vpack.c.bf16 %v561_v19, %v560_v18 }
  0x8b   :  { %1085 = vmatprep.subr.bf16.mxu0 %v1084_v24 }
  0x8e   :  { %1087 = vmatpush3.bf16.msra.mxu0 %v1084_v24  ;;  %v1172_v24 = vpack.c.bf16 %v563_v23, %v562_v22 }
  0x8f   :  { %1089 = vmatprep.subr.bf16.mxu0 %v1088_v27 }
  0x92   :  { %1091 = vmatpush3.bf16.msra.mxu0 %v1088_v27  ;;  %v1176_v27 = vpack.c.bf16 %v565_v26, %v564_v25 }
  0x93   :  { %1093 = vmatprep.subr.bf16.mxu0 %v1092_v30 }
  0x96   :  { %1095 = vmatpush3.bf16.msra.mxu0 %v1092_v30  ;;  %v1180_v30 = vpack.c.bf16 %v567_v29, %v566_v28 }
  0x99   :  { %893 = vmatmul.mubr.f32.vlgmr.msra.gmra.mrb[0].mxu0 %v256_v31  ;;  %v568_v31 = vld [vmem:[#allocation9 + $0x160] sm:$0xff] }
  0x9a   :  { %v1184_v33 = vpack.c.bf16 %v569_v32, %v568_v31 }
 0x16c   :  { %v894_v45 = vpop.f32.mrb[0].mxu0 }
 0x16d   :  { %v359_v46 = vadd.f32 %v894_v45, %v680_v44  ;;  %v340_v47 = vpop.f32.mrb[1].mxu0 }
 0x16e   :  { %v358_v48 = vadd.f32 %v680_v44, %v340_v47 }
 0x16f   :  { %v361_v51 = vmax.f32 %v359_v46, 0.0 }
 0x170   :  { %v360_v52 = vmax.f32 %v358_v48, 0.0 }
 0x171   :  { %365 = vst [vmem:[#allocation3 + $0x9] sm:$0xff] %v361_v51 }
 0x172   :  { %364 = vst [vmem:[#allocation3 + $0x1] sm:$0xff] %v360_v52  ;;  %927 = vmatprep.mubr.f32.mxu1 %v360_v52 }
 0x173   :  { %928 = vmatmul.mubr.f32.vlgmr.msra.gmra.mrb[0].mxu1 %v361_v51 }
 0x174   :  { %1131 = vmatpush3.bf16.msra.mxu1 %v1128_v43 }
 0x175   :  { %1133 = vmatprep.subr.bf16.mxu1 %v1132_v53 }
 0x178   :  { %1135 = vmatpush3.bf16.msra.mxu1 %v1132_v53  ;;  %v554_v37 = vld [vmem:[#allocation3 + $0xa] sm:$0xff] }
 0x179   :  { %v366_v59 = vld [vmem:[#allocation3] sm:$0xff]  ;;  %1137 = vmatprep.subr.bf16.mxu1 %v1136_v56  ;;  %v367_v17 = vld [vmem:[#allocation3 + $0x8] sm:$0xff] }
 0x17a   :  { %962 = vmatprep.mubr.f32.mxu1 %v366_v59  ;;  %v553_v20 = vld [vmem:[#allocation3 + $0x2] sm:$0xff] }
 0x17c   :  { %1139 = vmatpush3.bf16.msra.mxu1 %v1136_v56 }
 0x17d   :  { %1141 = vmatprep.subr.bf16.mxu1 %v1140_v60 }
 0x180   :  { %1143 = vmatpush3.bf16.msra.mxu1 %v1140_v60 }
 0x181   :  { %1145 = vmatprep.subr.bf16.mxu1 %v1144_v63 }
 0x184   :  { %1147 = vmatpush3.bf16.msra.mxu1 %v1144_v63 }
 0x185   :  { %1149 = vmatprep.subr.bf16.mxu1 %v1148_v2 }
 0x188   :  { %1151 = vmatpush3.bf16.msra.mxu1 %v1148_v2 }
 0x189   :  { %1153 = vmatprep.subr.bf16.mxu1 %v1152_v5 }
 0x18c   :  { %1155 = vmatpush3.bf16.msra.mxu1 %v1152_v5 }
 0x18d   :  { %1157 = vmatprep.subr.bf16.mxu1 %v1156_v8 }
 0x190   :  { %1159 = vmatpush3.bf16.msra.mxu1 %v1156_v8 }
 0x191   :  { %1161 = vmatprep.subr.bf16.mxu1 %v1160_v12 }
 0x193   :  { %963 = vmatmul.mubr.f32.vlgmr.msra.gmra.mrb[0].mxu1 %v367_v17 }
 0x194   :  { %1163 = vmatpush3.bf16.msra.mxu1 %v1160_v12  ;;  %997 = vmatprep.mubr.f32.mxu1 %v553_v20 }
 0x195   :  { %1165 = vmatprep.subr.bf16.mxu1 %v1164_v16 }
 0x198   :  { %1167 = vmatpush3.bf16.msra.mxu1 %v1164_v16 }
 0x199   :  { %1169 = vmatprep.subr.bf16.mxu1 %v1168_v21 }
 0x19c   :  { %1171 = vmatpush3.bf16.msra.mxu1 %v1168_v21 }
 0x19d   :  { %1173 = vmatprep.subr.bf16.mxu1 %v1172_v24 }
 0x1a0   :  { %1175 = vmatpush3.bf16.msra.mxu1 %v1172_v24 }
 0x1a1   :  { %1177 = vmatprep.subr.bf16.mxu1 %v1176_v27 }
 0x1a4   :  { %1179 = vmatpush3.bf16.msra.mxu1 %v1176_v27 }
 0x1a5   :  { %1181 = vmatprep.subr.bf16.mxu1 %v1180_v30 }
 0x1a8   :  { %1183 = vmatpush3.bf16.msra.mxu1 %v1180_v30 }
 0x1a9   :  { %1185 = vmatprep.subr.bf16.mxu1 %v1184_v33 }
 0x1ac   :  { %1187 = vmatpush3.bf16.msra.mxu1 %v1184_v33 }
 0x1ad   :  { %1189 = vmatprep.subr.bf16.mxu1 %v1188_v36 }
 0x1b0   :  { %1191 = vmatpush3.bf16.msra.mxu1 %v1188_v36 }
 0x1b3   :  { %998 = vmatmul.mubr.f32.vlgmr.msra.gmra.mrb[0].mxu1 %v554_v37 }
 0x286   :  { %v999_v39 = vpop.f32.mrb[0].mxu1 }
 0x287   :  { %v657_v40 = vadd.f32 %v999_v39, %v681_v38  ;;  %v638_v41 = vpop.f32.mrb[1].mxu1 }
 0x288   :  { %v656_v42 = vadd.f32 %v681_v38, %v638_v41 }
 0x289   :  { %v659_v43 = vadd.f32 %v657_v40, %v1394_v13 }
 0x28a   :  { %v658_v44 = vadd.f32 %v656_v42, %v1390_v10 }
 0x28b   :  { %661 = vst [vmem:[#allocation10 + $0x8] sm:$0xff] %v659_v43 }
 0x28c   :  { %660 = vst [vmem:[#allocation10] sm:$0xff] %v658_v44 }
 0x28d   :  { %1284 = shalt.err (!%p1281_p0)
}
 0x28e   :  { %s1285_s12 = scalar_lea.hbm %s1426_s5, 256 }
 0x28f   :  { %p1286_p1 = scmp.ne.s32.totalorder %s1426_s5, %s1285_s12  ;;  %p1289_p2 = scmp.lt.u32.totalorder %s1285_s12, %s1426_s5 }
 0x291   :  { %p1291_p3 = pnand %p1289_p2, %p1286_p1 }
 0x293   :  { %1294 = shalt.err (!%p1291_p3)
}
 0x294   :  { %673 = dma.vmem_to_hbm [thread:$0]  %s668_s9, 256, %s1426_s5, [#allocation6], %s1303_s30, %s1303_s30, %s1304_s6  }
 0x295   :  { %1299 = dma.done.wait [#allocation6], 256  }
 0x296   :  { %1300 = vsyncadd [#allocation6], 4294967040 }
 0x297   :  { %677 = vsyncpa [#allocation5], 1 }
 0x298   :  { %678 = vsyncpa [#allocation8], 1 }
 0x299   :  { %679 = vsyncpa [#allocation6], 1 }

</bundles_post_ra>
